<compile_context>
chip_gen: v7x
topology: tpu7x:2x2x1
jax: 0.10.0
libtpu: 0.0.40
codegen_flags: <defaults>
</compile_context>

<pallas_src>
import jax
import jax.numpy as jnp
from jax.experimental import pallas as pl
from jax.experimental.pallas import tpu as pltpu

EPS = 1e-5


def _pad128(n):
    return ((n + 127) // 128) * 128


def generator_kernel(z_ref, w1_ref, w2_ref, w3_hbm, w4_hbm, p_ref,
                     o_ref, w3_vmem, w4_vmem, sem):
    # Kick off the big weight DMAs immediately; overlap with layer-1/2 work.
    cp3 = pltpu.make_async_copy(w3_hbm, w3_vmem, sem.at[0])
    cp4 = pltpu.make_async_copy(w4_hbm, w4_vmem, sem.at[1])
    cp3.start()
    cp4.start()

    def linear(x, w, b):
        # Explicit bf16 x bf16 MXU matmul with f32 accumulation.
        return jnp.dot(x.astype(jnp.bfloat16), w,
                       preferred_element_type=jnp.float32) + b

    def batchnorm(x, g, be):
        # PyTorch BatchNorm1d training mode: biased variance over the batch.
        mean = jnp.mean(x, axis=0, keepdims=True)
        var = jnp.mean((x - mean) * (x - mean), axis=0, keepdims=True)
        inv = jax.lax.rsqrt(var + EPS)
        scale = inv * g
        shift = be - mean * scale
        return x * scale + shift

    # Layer 1: latent_pad -> 256
    h = jnp.maximum(linear(z_ref[...], w1_ref[...], p_ref[0:1, 0:256]), 0.0)
    h = batchnorm(h, p_ref[1:2, 0:256], p_ref[2:3, 0:256])

    # Layer 2: 256 -> 512
    h = jnp.maximum(linear(h, w2_ref[...], p_ref[3:4, 0:512]), 0.0)
    h = batchnorm(h, p_ref[4:5, 0:512], p_ref[5:6, 0:512])

    # Layer 3: 512 -> 1024 (wait only now for its weights)
    cp3.wait()
    h = jnp.maximum(linear(h, w3_vmem[...], p_ref[6:7, 0:1024]), 0.0)
    h = batchnorm(h, p_ref[7:8, 0:1024], p_ref[8:9, 0:1024])

    # Layer 4: 1024 -> out_pad, tanh
    cp4.wait()
    out_pad = o_ref.shape[1]
    o_ref[...] = jnp.tanh(linear(h, w4_vmem[...], p_ref[9:10, 0:out_pad]))


def generator_forward(z, params, out_dim):
    """Runs the fused generator forward. Returns (batch, out_dim) float32."""
    w1, w2, w3, w4, small = params
    latent = z.shape[1]
    latent_pad = w1.shape[0]
    if latent_pad != latent:
        # Cheap per-call pad of the tiny z; w1 was pre-padded in init_params.
        z = jnp.pad(z, ((0, 0), (0, latent_pad - latent)))
    batch = z.shape[0]
    out_pad = w4.shape[1]

    cost = pl.CostEstimate(
        flops=2 * batch * (latent_pad * 256 + 256 * 512 + 512 * 1024
                           + 1024 * out_pad),
        transcendentals=batch * out_pad + (256 + 512 + 1024),
        bytes_accessed=2 * (w1.size + w2.size + w3.size + w4.size)
                       + 4 * (small.size + z.size + batch * out_pad),
    )

    out = pl.pallas_call(
        generator_kernel,
        out_shape=jax.ShapeDtypeStruct((batch, out_pad), jnp.float32),
        in_specs=[
            pl.BlockSpec(memory_space=pltpu.MemorySpace.VMEM),  # z
            pl.BlockSpec(memory_space=pltpu.MemorySpace.VMEM),  # w1
            pl.BlockSpec(memory_space=pltpu.MemorySpace.VMEM),  # w2
            pl.BlockSpec(memory_space=pl.ANY),                  # w3 (manual DMA)
            pl.BlockSpec(memory_space=pl.ANY),                  # w4 (manual DMA)
            pl.BlockSpec(memory_space=pltpu.MemorySpace.VMEM),  # packed small params
        ],
        out_specs=pl.BlockSpec(memory_space=pltpu.MemorySpace.VMEM),
        scratch_shapes=[
            pltpu.VMEM((512, 1024), jnp.bfloat16),       # w3 landing buffer
            pltpu.VMEM((1024, out_pad), jnp.bfloat16),   # w4 landing buffer
            pltpu.SemaphoreType.DMA((2,)),
        ],
        cost_estimate=cost,
    )(z, w1, w2, w3, w4, small)
    return out[:, :out_dim]


def init_params(key, latent_dim, input_dim):
    """One-time parameter prep (PyTorch-style init, pre-padded, packed).

    Weights are stored transposed as (in, out) in bfloat16 (halves dominant
    HBM bytes).  w1 is zero-padded on the latent dim to a multiple of 128,
    w4 is zero-padded on the output dim to a multiple of 128.  All biases and
    BatchNorm gamma/beta are packed into a single (10, 1024) float32 slab:
      row 0/1/2: b1 / gamma1 / beta1   (width 256)
      row 3/4/5: b2 / gamma2 / beta2   (width 512)
      row 6/7/8: b3 / gamma3 / beta3   (width 1024)
      row 9    : b4                    (width input_dim, zero-padded)
    """
    latent_pad = _pad128(latent_dim)
    out_pad = _pad128(input_dim)
    slab_w = max(1024, out_pad)

    dims_in = [latent_dim, 256, 512, 1024]
    dims_out = [256, 512, 1024, input_dim]
    bias_rows = [0, 3, 6, 9]

    keys = jax.random.split(key, 8)
    small = jnp.zeros((10, slab_w), jnp.float32)
    small = small.at[1, :256].set(1.0)    # gamma1
    small = small.at[4, :512].set(1.0)    # gamma2
    small = small.at[7, :1024].set(1.0)   # gamma3

    ws = []
    for i in range(4):
        fan_in, fan_out = dims_in[i], dims_out[i]
        bound = 1.0 / (fan_in ** 0.5)
        w = jax.random.uniform(keys[2 * i], (fan_in, fan_out),
                               minval=-bound, maxval=bound, dtype=jnp.float32)
        b = jax.random.uniform(keys[2 * i + 1], (fan_out,),
                               minval=-bound, maxval=bound, dtype=jnp.float32)
        if i == 0 and latent_pad != fan_in:
            w = jnp.pad(w, ((0, latent_pad - fan_in), (0, 0)))
        if i == 3 and out_pad != fan_out:
            w = jnp.pad(w, ((0, 0), (0, out_pad - fan_out)))
        ws.append(w.astype(jnp.bfloat16))
        small = small.at[bias_rows[i], :fan_out].set(b)

    return (ws[0], ws[1], ws[2], ws[3], small)


def reference_forward(z, params, latent_dim, input_dim):
    """Pure-JAX f32 reference (weights dequantized exactly as stored)."""
    w1, w2, w3, w4, small = params
    w1 = w1[:latent_dim].astype(jnp.float32)
    w2 = w2.astype(jnp.float32)
    w3 = w3.astype(jnp.float32)
    w4 = w4[:, :input_dim].astype(jnp.float32)
    b1, g1, be1 = small[0, :256], small[1, :256], small[2, :256]
    b2, g2, be2 = small[3, :512], small[4, :512], small[5, :512]
    b3, g3, be3 = small[6, :1024], small[7, :1024], small[8, :1024]
    b4 = small[9, :input_dim]

    def bn(x, g, be):
        m = jnp.mean(x, axis=0, keepdims=True)
        v = jnp.mean((x - m) ** 2, axis=0, keepdims=True)
        return (x - m) / jnp.sqrt(v + EPS) * g + be

    h = bn(jnp.maximum(z @ w1 + b1, 0.0), g1, be1)
    h = bn(jnp.maximum(h @ w2 + b2, 0.0), g2, be2)
    h = bn(jnp.maximum(h @ w3 + b3, 0.0), g3, be3)
    return jnp.tanh(h @ w4 + b4)


if __name__ == "__main__":
    batch = 8
    latent_dim = 100   # module default
    input_dim = 64

    key = jax.random.PRNGKey(0)
    k_z, k_p = jax.random.split(key)
    z = jax.random.normal(k_z, (batch, latent_dim), dtype=jnp.float32)
    params = init_params(k_p, latent_dim, input_dim)

    out = generator_forward(z, params, input_dim)
    out = jax.block_until_ready(out)

    ref = reference_forward(z, params, latent_dim, input_dim)
    assert out.shape == (batch, input_dim)
    # Tolerance sized for bf16 activations/weights on the MXU vs f32 reference.
    assert jnp.allclose(out, ref, atol=2e-2, rtol=2e-2), "mismatch vs JAX reference"

    print("KERNEL_OK")
</pallas_src>

<mosaic_0001>
module attributes {stable_mosaic.version = 11 : i64} {
  func.func @generator_kernel(%arg0: memref<8x128xf32, #tpu.memory_space<vmem>>, %arg1: memref<128x256xbf16, #tpu.memory_space<vmem>>, %arg2: memref<256x512xbf16, #tpu.memory_space<vmem>>, %arg3: memref<512x1024xbf16, #tpu.memory_space<any>>, %arg4: memref<1024x128xbf16, #tpu.memory_space<any>>, %arg5: memref<10x1024xf32, #tpu.memory_space<vmem>>, %arg6: memref<8x128xf32, #tpu.memory_space<vmem>>, %arg7: memref<512x1024xbf16, #tpu.memory_space<vmem>>, %arg8: memref<1024x128xbf16, #tpu.memory_space<vmem>>, %arg9: memref<2x!tpu.dma_semaphore, #tpu.memory_space<semaphore_mem>>) attributes {dimension_semantics = [], scalar_prefetch = 0 : i64, scratch_operands = 3 : i64, tpu.core_type = #tpu.core_type<tc>} {
    %c0_i32 = arith.constant 0 : i32
    %0 = tpu.memref_slice %arg9[%c0_i32] : memref<2x!tpu.dma_semaphore, #tpu.memory_space<semaphore_mem>> -> memref<1x!tpu.dma_semaphore, #tpu.memory_space<semaphore_mem>>
    %1 = tpu.memref_squeeze %0 : memref<1x!tpu.dma_semaphore, #tpu.memory_space<semaphore_mem>> -> memref<!tpu.dma_semaphore, #tpu.memory_space<semaphore_mem>>
    tpu.enqueue_dma source(%arg3 : memref<512x1024xbf16, #tpu.memory_space<any>>) target(%arg7 : memref<512x1024xbf16, #tpu.memory_space<vmem>>) target_semaphore(%1 : memref<!tpu.dma_semaphore, #tpu.memory_space<semaphore_mem>>)
    %c1_i32 = arith.constant 1 : i32
    %2 = tpu.memref_slice %arg9[%c1_i32] : memref<2x!tpu.dma_semaphore, #tpu.memory_space<semaphore_mem>> -> memref<1x!tpu.dma_semaphore, #tpu.memory_space<semaphore_mem>>
    %3 = tpu.memref_squeeze %2 : memref<1x!tpu.dma_semaphore, #tpu.memory_space<semaphore_mem>> -> memref<!tpu.dma_semaphore, #tpu.memory_space<semaphore_mem>>
    tpu.enqueue_dma source(%arg4 : memref<1024x128xbf16, #tpu.memory_space<any>>) target(%arg8 : memref<1024x128xbf16, #tpu.memory_space<vmem>>) target_semaphore(%3 : memref<!tpu.dma_semaphore, #tpu.memory_space<semaphore_mem>>)
    %c0 = arith.constant 0 : index
    %c0_0 = arith.constant 0 : index
    %4 = vector.load %arg0[%c0, %c0_0] : memref<8x128xf32, #tpu.memory_space<vmem>>, vector<8x128xf32>
    %c0_1 = arith.constant 0 : index
    %c0_2 = arith.constant 0 : index
    %5 = vector.load %arg1[%c0_1, %c0_2] : memref<128x256xbf16, #tpu.memory_space<vmem>>, vector<128x256xbf16>
    %c0_3 = arith.constant 0 : index
    %c0_4 = arith.constant 0 : index
    %6 = vector.load %arg5[%c0_3, %c0_4] : memref<10x1024xf32, #tpu.memory_space<vmem>>, vector<1x256xf32>
    %7 = arith.truncf %4 : vector<8x128xf32> to vector<8x128xbf16>
    %cst = arith.constant dense<0.000000e+00> : vector<8x256xf32>
    %8 = tpu.matmul %7, %5, %cst {dimension_numbers = #tpu.dot_dimension_numbers<[1], [0], [0], [1], [0, 0, 1, 1], [], []>} : vector<8x128xbf16>, vector<128x256xbf16>, vector<8x256xf32> -> vector<8x256xf32>
    %9 = vector.broadcast %6 : vector<1x256xf32> to vector<8x256xf32>
    %10 = arith.addf %8, %9 : vector<8x256xf32>
    %cst_5 = arith.constant 0.000000e+00 : f32
    %11 = vector.broadcast %cst_5 : f32 to vector<8x256xf32>
    %12 = arith.maximumf %10, %11 : vector<8x256xf32>
    %c1 = arith.constant 1 : index
    %c0_6 = arith.constant 0 : index
    %13 = vector.load %arg5[%c1, %c0_6] : memref<10x1024xf32, #tpu.memory_space<vmem>>, vector<1x256xf32>
    %c2 = arith.constant 2 : index
    %c0_7 = arith.constant 0 : index
    %14 = vector.load %arg5[%c2, %c0_7] : memref<10x1024xf32, #tpu.memory_space<vmem>>, vector<1x256xf32>
    %cst_8 = arith.constant dense<0.000000e+00> : vector<256xf32>
    %15 = vector.multi_reduction <add>, %12, %cst_8 [0] : vector<8x256xf32> to vector<256xf32>
    %16 = vector.shape_cast %15 : vector<256xf32> to vector<1x256xf32>
    %cst_9 = arith.constant 8.000000e+00 : f32
    %17 = vector.broadcast %cst_9 : f32 to vector<1x256xf32>
    %18 = arith.divf %16, %17 : vector<1x256xf32>
    %19 = vector.broadcast %18 : vector<1x256xf32> to vector<8x256xf32>
    %20 = arith.subf %12, %19 : vector<8x256xf32>
    %21 = vector.broadcast %18 : vector<1x256xf32> to vector<8x256xf32>
    %22 = arith.subf %12, %21 : vector<8x256xf32>
    %23 = arith.mulf %20, %22 : vector<8x256xf32>
    %cst_10 = arith.constant dense<0.000000e+00> : vector<256xf32>
    %24 = vector.multi_reduction <add>, %23, %cst_10 [0] : vector<8x256xf32> to vector<256xf32>
    %25 = vector.shape_cast %24 : vector<256xf32> to vector<1x256xf32>
    %cst_11 = arith.constant 8.000000e+00 : f32
    %26 = vector.broadcast %cst_11 : f32 to vector<1x256xf32>
    %27 = arith.divf %25, %26 : vector<1x256xf32>
    %cst_12 = arith.constant 9.99999974E-6 : f32
    %28 = vector.broadcast %cst_12 : f32 to vector<1x256xf32>
    %29 = arith.addf %27, %28 : vector<1x256xf32>
    %30 = math.rsqrt %29 : vector<1x256xf32>
    %31 = arith.mulf %30, %13 : vector<1x256xf32>
    %32 = arith.mulf %18, %31 : vector<1x256xf32>
    %33 = arith.subf %14, %32 : vector<1x256xf32>
    %34 = vector.broadcast %31 : vector<1x256xf32> to vector<8x256xf32>
    %35 = arith.mulf %12, %34 : vector<8x256xf32>
    %36 = vector.broadcast %33 : vector<1x256xf32> to vector<8x256xf32>
    %37 = arith.addf %35, %36 : vector<8x256xf32>
    %c0_13 = arith.constant 0 : index
    %c0_14 = arith.constant 0 : index
    %38 = vector.load %arg2[%c0_13, %c0_14] : memref<256x512xbf16, #tpu.memory_space<vmem>>, vector<256x512xbf16>
    %c3 = arith.constant 3 : index
    %c0_15 = arith.constant 0 : index
    %39 = vector.load %arg5[%c3, %c0_15] : memref<10x1024xf32, #tpu.memory_space<vmem>>, vector<1x512xf32>
    %40 = arith.truncf %37 : vector<8x256xf32> to vector<8x256xbf16>
    %cst_16 = arith.constant dense<0.000000e+00> : vector<8x512xf32>
    %41 = tpu.matmul %40, %38, %cst_16 {dimension_numbers = #tpu.dot_dimension_numbers<[1], [0], [0], [1], [0, 0, 1, 1], [], []>} : vector<8x256xbf16>, vector<256x512xbf16>, vector<8x512xf32> -> vector<8x512xf32>
    %42 = vector.broadcast %39 : vector<1x512xf32> to vector<8x512xf32>
    %43 = arith.addf %41, %42 : vector<8x512xf32>
    %cst_17 = arith.constant 0.000000e+00 : f32
    %44 = vector.broadcast %cst_17 : f32 to vector<8x512xf32>
    %45 = arith.maximumf %43, %44 : vector<8x512xf32>
    %c4 = arith.constant 4 : index
    %c0_18 = arith.constant 0 : index
    %46 = vector.load %arg5[%c4, %c0_18] : memref<10x1024xf32, #tpu.memory_space<vmem>>, vector<1x512xf32>
    %c5 = arith.constant 5 : index
    %c0_19 = arith.constant 0 : index
    %47 = vector.load %arg5[%c5, %c0_19] : memref<10x1024xf32, #tpu.memory_space<vmem>>, vector<1x512xf32>
    %cst_20 = arith.constant dense<0.000000e+00> : vector<512xf32>
    %48 = vector.multi_reduction <add>, %45, %cst_20 [0] : vector<8x512xf32> to vector<512xf32>
    %49 = vector.shape_cast %48 : vector<512xf32> to vector<1x512xf32>
    %cst_21 = arith.constant 8.000000e+00 : f32
    %50 = vector.broadcast %cst_21 : f32 to vector<1x512xf32>
    %51 = arith.divf %49, %50 : vector<1x512xf32>
    %52 = vector.broadcast %51 : vector<1x512xf32> to vector<8x512xf32>
    %53 = arith.subf %45, %52 : vector<8x512xf32>
    %54 = vector.broadcast %51 : vector<1x512xf32> to vector<8x512xf32>
    %55 = arith.subf %45, %54 : vector<8x512xf32>
    %56 = arith.mulf %53, %55 : vector<8x512xf32>
    %cst_22 = arith.constant dense<0.000000e+00> : vector<512xf32>
    %57 = vector.multi_reduction <add>, %56, %cst_22 [0] : vector<8x512xf32> to vector<512xf32>
    %58 = vector.shape_cast %57 : vector<512xf32> to vector<1x512xf32>
    %cst_23 = arith.constant 8.000000e+00 : f32
    %59 = vector.broadcast %cst_23 : f32 to vector<1x512xf32>
    %60 = arith.divf %58, %59 : vector<1x512xf32>
    %cst_24 = arith.constant 9.99999974E-6 : f32
    %61 = vector.broadcast %cst_24 : f32 to vector<1x512xf32>
    %62 = arith.addf %60, %61 : vector<1x512xf32>
    %63 = math.rsqrt %62 : vector<1x512xf32>
    %64 = arith.mulf %63, %46 : vector<1x512xf32>
    %65 = arith.mulf %51, %64 : vector<1x512xf32>
    %66 = arith.subf %47, %65 : vector<1x512xf32>
    %67 = vector.broadcast %64 : vector<1x512xf32> to vector<8x512xf32>
    %68 = arith.mulf %45, %67 : vector<8x512xf32>
    %69 = vector.broadcast %66 : vector<1x512xf32> to vector<8x512xf32>
    %70 = arith.addf %68, %69 : vector<8x512xf32>
    %c0_i32_25 = arith.constant 0 : i32
    %71 = tpu.memref_slice %arg9[%c0_i32_25] : memref<2x!tpu.dma_semaphore, #tpu.memory_space<semaphore_mem>> -> memref<1x!tpu.dma_semaphore, #tpu.memory_space<semaphore_mem>>
    %72 = tpu.memref_squeeze %71 : memref<1x!tpu.dma_semaphore, #tpu.memory_space<semaphore_mem>> -> memref<!tpu.dma_semaphore, #tpu.memory_space<semaphore_mem>>
    tpu.wait_dma2 semaphore(%72 : memref<!tpu.dma_semaphore, #tpu.memory_space<semaphore_mem>>) src(%arg3 : memref<512x1024xbf16, #tpu.memory_space<any>>) dst(%arg7 : memref<512x1024xbf16, #tpu.memory_space<vmem>>)
    %c0_26 = arith.constant 0 : index
    %c0_27 = arith.constant 0 : index
    %73 = vector.load %arg7[%c0_26, %c0_27] : memref<512x1024xbf16, #tpu.memory_space<vmem>>, vector<512x1024xbf16>
    %c6 = arith.constant 6 : index
    %c0_28 = arith.constant 0 : index
    %74 = vector.load %arg5[%c6, %c0_28] : memref<10x1024xf32, #tpu.memory_space<vmem>>, vector<1x1024xf32>
    %75 = arith.truncf %70 : vector<8x512xf32> to vector<8x512xbf16>
    %cst_29 = arith.constant dense<0.000000e+00> : vector<8x1024xf32>
    %76 = tpu.matmul %75, %73, %cst_29 {dimension_numbers = #tpu.dot_dimension_numbers<[1], [0], [0], [1], [0, 0, 1, 1], [], []>} : vector<8x512xbf16>, vector<512x1024xbf16>, vector<8x1024xf32> -> vector<8x1024xf32>
    %77 = vector.broadcast %74 : vector<1x1024xf32> to vector<8x1024xf32>
    %78 = arith.addf %76, %77 : vector<8x1024xf32>
    %cst_30 = arith.constant 0.000000e+00 : f32
    %79 = vector.broadcast %cst_30 : f32 to vector<8x1024xf32>
    %80 = arith.maximumf %78, %79 : vector<8x1024xf32>
    %c7 = arith.constant 7 : index
    %c0_31 = arith.constant 0 : index
    %81 = vector.load %arg5[%c7, %c0_31] : memref<10x1024xf32, #tpu.memory_space<vmem>>, vector<1x1024xf32>
    %c8 = arith.constant 8 : index
    %c0_32 = arith.constant 0 : index
    %82 = vector.load %arg5[%c8, %c0_32] : memref<10x1024xf32, #tpu.memory_space<vmem>>, vector<1x1024xf32>
    %cst_33 = arith.constant dense<0.000000e+00> : vector<1024xf32>
    %83 = vector.multi_reduction <add>, %80, %cst_33 [0] : vector<8x1024xf32> to vector<1024xf32>
    %84 = vector.shape_cast %83 : vector<1024xf32> to vector<1x1024xf32>
    %cst_34 = arith.constant 8.000000e+00 : f32
    %85 = vector.broadcast %cst_34 : f32 to vector<1x1024xf32>
    %86 = arith.divf %84, %85 : vector<1x1024xf32>
    %87 = vector.broadcast %86 : vector<1x1024xf32> to vector<8x1024xf32>
    %88 = arith.subf %80, %87 : vector<8x1024xf32>
    %89 = vector.broadcast %86 : vector<1x1024xf32> to vector<8x1024xf32>
    %90 = arith.subf %80, %89 : vector<8x1024xf32>
    %91 = arith.mulf %88, %90 : vector<8x1024xf32>
    %cst_35 = arith.constant dense<0.000000e+00> : vector<1024xf32>
    %92 = vector.multi_reduction <add>, %91, %cst_35 [0] : vector<8x1024xf32> to vector<1024xf32>
    %93 = vector.shape_cast %92 : vector<1024xf32> to vector<1x1024xf32>
    %cst_36 = arith.constant 8.000000e+00 : f32
    %94 = vector.broadcast %cst_36 : f32 to vector<1x1024xf32>
    %95 = arith.divf %93, %94 : vector<1x1024xf32>
    %cst_37 = arith.constant 9.99999974E-6 : f32
    %96 = vector.broadcast %cst_37 : f32 to vector<1x1024xf32>
    %97 = arith.addf %95, %96 : vector<1x1024xf32>
    %98 = math.rsqrt %97 : vector<1x1024xf32>
    %99 = arith.mulf %98, %81 : vector<1x1024xf32>
    %100 = arith.mulf %86, %99 : vector<1x1024xf32>
    %101 = arith.subf %82, %100 : vector<1x1024xf32>
    %102 = vector.broadcast %99 : vector<1x1024xf32> to vector<8x1024xf32>
    %103 = arith.mulf %80, %102 : vector<8x1024xf32>
    %104 = vector.broadcast %101 : vector<1x1024xf32> to vector<8x1024xf32>
    %105 = arith.addf %103, %104 : vector<8x1024xf32>
    %c1_i32_38 = arith.constant 1 : i32
    %106 = tpu.memref_slice %arg9[%c1_i32_38] : memref<2x!tpu.dma_semaphore, #tpu.memory_space<semaphore_mem>> -> memref<1x!tpu.dma_semaphore, #tpu.memory_space<semaphore_mem>>
    %107 = tpu.memref_squeeze %106 : memref<1x!tpu.dma_semaphore, #tpu.memory_space<semaphore_mem>> -> memref<!tpu.dma_semaphore, #tpu.memory_space<semaphore_mem>>
    tpu.wait_dma2 semaphore(%107 : memref<!tpu.dma_semaphore, #tpu.memory_space<semaphore_mem>>) src(%arg4 : memref<1024x128xbf16, #tpu.memory_space<any>>) dst(%arg8 : memref<1024x128xbf16, #tpu.memory_space<vmem>>)
    %c0_39 = arith.constant 0 : index
    %c0_40 = arith.constant 0 : index
    %108 = vector.load %arg8[%c0_39, %c0_40] : memref<1024x128xbf16, #tpu.memory_space<vmem>>, vector<1024x128xbf16>
    %c9 = arith.constant 9 : index
    %c0_41 = arith.constant 0 : index
    %109 = vector.load %arg5[%c9, %c0_41] : memref<10x1024xf32, #tpu.memory_space<vmem>>, vector<1x128xf32>
    %110 = arith.truncf %105 : vector<8x1024xf32> to vector<8x1024xbf16>
    %cst_42 = arith.constant dense<0.000000e+00> : vector<8x128xf32>
    %111 = tpu.matmul %110, %108, %cst_42 {dimension_numbers = #tpu.dot_dimension_numbers<[1], [0], [0], [1], [0, 0, 1, 1], [], []>} : vector<8x1024xbf16>, vector<1024x128xbf16>, vector<8x128xf32> -> vector<8x128xf32>
    %112 = vector.broadcast %109 : vector<1x128xf32> to vector<8x128xf32>
    %113 = arith.addf %111, %112 : vector<8x128xf32>
    %114 = math.tanh %113 : vector<8x128xf32>
    %c0_43 = arith.constant 0 : index
    %c0_44 = arith.constant 0 : index
    %115 = vector.load %arg6[%c0_43, %c0_44] : memref<8x128xf32, #tpu.memory_space<vmem>>, vector<8x128xf32>
    tpu.vector_store %arg6[%c0_43, %c0_44], %114 {strides = array<i32>} : memref<8x128xf32, #tpu.memory_space<vmem>>, vector<8x128xf32>,
    return
  }
}

</mosaic_0001>

<bundles_post_ra>
// kernel: tpu_custom_call.1
= control target key start
LH: loop header
LB: loop body
LE: loop exit
PB: predicated region body
PF: predicated region fallthrough
CT: control target
= control target key end

     0   :  { %11 = vsyncpa [#allocation6], 0  ;;  %s3244_s0 = inlined_call_operand.hbm [shape: f32[8,128], index: 0, kind: input, shape index: {}]   ;;  %s3245_s1 = inlined_call_operand.hbm [shape: bf16[128,256], index: 1, kind: input, shape index: {}]   ;;  %s3246_s2 = inlined_call_operand.hbm [shape: bf16[256,512], index: 2, kind: input, shape index: {}]   ;;  %s3247_s3 = inlined_call_operand.hbm [shape: bf16[512,1024], index: 3, kind: input, shape index: {}]   ;;  %s3248_s4 = inlined_call_operand.hbm [shape: bf16[1024,128], index: 4, kind: input, shape index: {}]   ;;  %s3249_s5 = inlined_call_operand.hbm [shape: f32[10,1024], index: 5, kind: input, shape index: {}]   ;;  %s3250_s6 = inlined_call_operand.hbm [shape: f32[8,128], index: 6, kind: output, shape index: {}]  }
   0x1   :  { %12 = vsyncpa [#allocation9], 0 }
   0x2   :  { %13 = vsyncpa [#allocation12], 0 }
   0x3   :  { %14 = vsyncpa [#allocation7], 0  ;;  %s2828_s21 = smov [#allocation8]   ;;  %s2684_s25 = scalar_lea.hbm %s3245_s1, 2048 }
   0x4   :  { %s30_s22 = sshll.u32 %s2828_s21, 4  ;;  %p2685_p0 = scmp.ne.s32.totalorder %s3245_s1, %s2684_s25  ;;  %s31_s22 = int_to_ptr.vmem [resolvable:$true] %s30_s22 }
   0x5   :  { %p2688_p1 = scmp.lt.u32.totalorder %s2684_s25, %s3245_s1 }
   0x7   :  { %p2690_p2 = pnand %p2688_p1, %p2685_p0 }
   0x9   :  { %2693 = shalt.err (!%p2690_p2)
}
   0xa   :  { %s2694_s30 = scalar_lea.vmem %s31_s22, 2048  ;;  %p2699_p4 = scmp.lt.s32.totalorder %s31_s22, %s31_s22 }
   0xb   :  { %p2695_p3 = scmp.ne.s32.totalorder %s31_s22, %s2694_s30  ;;  %p2700_p5 = scmp.lt.s32.totalorder %s2694_s30, %s2694_s30 }
   0xd   :  { %p2701_p6 = por %p2700_p5, %p2699_p4 }
   0xf   :  { %p2702_p7 = pnand %p2701_p6, %p2695_p3 }
  0x11   :  { %2705 = shalt.err (!%p2702_p7)
}
  0x12   :  { %s2829_s7 = smov 128   ;;  %s2830_s8 = smov 8  }
  0x13   :  { %36 = dma.hbm_to_vmem [thread:$0]  %s3245_s1, 2048, %s31_s22, [#allocation9], %s2829_s7, %s2829_s7, %s2830_s8  }
  0x14   :  { %s2831_s11 = smov [#allocation5]   ;;  %s2832_s13 = smov [#allocation10]  }
  0x15   :  { %s21_s12 = sshll.u32 %s2831_s11, 4  ;;  %s42_s14 = sshll.u32 %s2832_s13, 4  ;;  %s22_s12 = int_to_ptr.vmem [resolvable:$true] %s21_s12  ;;  %s43_s14 = int_to_ptr.vmem [resolvable:$true] %s42_s14 }
  0x16   :  { %s2706_s17 = scalar_lea.hbm %s3244_s0, 128 }
  0x17   :  { %p2707_p8 = scmp.ne.s32.totalorder %s3244_s0, %s2706_s17  ;;  %p2710_p9 = scmp.lt.u32.totalorder %s2706_s17, %s3244_s0 }
  0x19   :  { %p2712_p10 = pnand %p2710_p9, %p2707_p8 }
  0x1b   :  { %2715 = shalt.err (!%p2712_p10)
}
  0x1c   :  { %s2716_s1 = scalar_lea.vmem %s22_s12, 128  ;;  %p2721_p12 = scmp.lt.s32.totalorder %s22_s12, %s22_s12 }
  0x1d   :  { %p2717_p11 = scmp.ne.s32.totalorder %s22_s12, %s2716_s1  ;;  %p2722_p13 = scmp.lt.s32.totalorder %s2716_s1, %s2716_s1 }
  0x1f   :  { %p2723_p0 = por %p2722_p13, %p2721_p12 }
  0x21   :  { %p2724_p1 = pnand %p2723_p0, %p2717_p11 }
  0x23   :  { %2727 = shalt.err (!%p2724_p1)
}
  0x24   :  { %24 = dma.hbm_to_vmem [thread:$0]  %s3244_s0, 128, %s22_s12, [#allocation6]  }
  0x25   :  { %s2728_s26 = scalar_lea.hbm %s3246_s2, 8192 }
  0x26   :  { %p2729_p2 = scmp.ne.s32.totalorder %s3246_s2, %s2728_s26  ;;  %p2732_p3 = scmp.lt.u32.totalorder %s2728_s26, %s3246_s2 }
  0x28   :  { %p2734_p4 = pnand %p2732_p3, %p2729_p2 }
  0x2a   :  { %2737 = shalt.err (!%p2734_p4)
}
  0x2b   :  { %s2738_s9 = scalar_lea.vmem %s43_s14, 8192  ;;  %p2743_p6 = scmp.lt.s32.totalorder %s43_s14, %s43_s14 }
  0x2c   :  { %p2739_p5 = scmp.ne.s32.totalorder %s43_s14, %s2738_s9  ;;  %p2744_p7 = scmp.lt.s32.totalorder %s2738_s9, %s2738_s9 }
  0x2e   :  { %p2745_p8 = por %p2744_p7, %p2743_p6 }
  0x30   :  { %p2746_p9 = pnand %p2745_p8, %p2739_p5 }
  0x32   :  { %2749 = shalt.err (!%p2746_p9)
}
  0x33   :  { %s2833_s0 = smov 256   ;;  %s2834_s10 = smov 16  }
  0x34   :  { %48 = dma.hbm_to_vmem [thread:$0]  %s3246_s2, 8192, %s43_s14, [#allocation9], %s2833_s0, %s2833_s0, %s2834_s10  }
  0x35   :  { %s2835_s13 = smov [#allocation11]   ;;  %s2750_s18 = scalar_lea.hbm %s3249_s5, 2048 }
  0x36   :  { %s54_s15 = sshll.u32 %s2835_s13, 4  ;;  %p2751_p10 = scmp.ne.s32.totalorder %s3249_s5, %s2750_s18  ;;  %s55_s15 = int_to_ptr.vmem [resolvable:$true] %s54_s15 }
  0x37   :  { %p2754_p11 = scmp.lt.u32.totalorder %s2750_s18, %s3249_s5 }
  0x39   :  { %p2756_p12 = pnand %p2754_p11, %p2751_p10 }
  0x3b   :  { %2759 = shalt.err (!%p2756_p12)
}
  0x3c   :  { %s2760_s22 = scalar_lea.vmem %s55_s15, 2048  ;;  %p2765_p0 = scmp.lt.s32.totalorder %s55_s15, %s55_s15 }
  0x3d   :  { %p2761_p13 = scmp.ne.s32.totalorder %s55_s15, %s2760_s22  ;;  %p2766_p1 = scmp.lt.s32.totalorder %s2760_s22, %s2760_s22 }
  0x3f   :  { %p2767_p2 = por %p2766_p1, %p2765_p0 }
  0x41   :  { %p2768_p3 = pnand %p2767_p2, %p2761_p13 }
  0x43   :  { %2771 = shalt.err (!%p2768_p3)
}
  0x44   :  { %s2836_s2 = smov 1024   ;;  %s2837_s14 = smov 64  }
  0x45   :  { %60 = dma.hbm_to_vmem [thread:$0]  %s3249_s5, 2048, %s55_s15, [#allocation12], %s2836_s2, %s2836_s2, %s2837_s14  }
  0x46   :  { %2816 = dma.done.wait [#allocation6], 128  }
  0x47   :  { %2817 = vsyncadd [#allocation6], 4294967168 }
  0x48   :  { %2818 = dma.done.wait [#allocation9], 10240  }
  0x49   :  { %2819 = vsyncadd [#allocation9], 4294957056 }
  0x4a   :  { %2820 = dma.done.wait [#allocation12], 2048  }
  0x4b   :  { %2821 = vsyncadd [#allocation12], 4294965248  ;;  %s78_s25 = sld [smem:[#allocation0]]   ;;  %90 = sst [smem:[#allocation15]] %s2836_s2  ;;  %v2838_v0 = vmov 0  }
  0x4c   :  { %263 = vmatprep.mubr.bf16.mxu0 %v2838_v0  ;;  %92 = sst [smem:[#allocation15 + $0x1]] %s2836_s2  ;;  %s2839_s26 = smov [#allocation2]  }
  0x4d   :  { %94 = sst [smem:[#allocation15 + $0x2]] %s2830_s8  ;;  %s86_s27 = sshll.u32 %s2839_s26, 4  ;;  %s87_s27 = int_to_ptr.vmem [resolvable:$true] %s86_s27 }
  0x4e   :  { %96 = sst [smem:[#allocation15 + $0x3]] %s2837_s14  ;;  %s2840_s5 = smov 2  }
  0x4f   :  { %98 = sst [smem:[#allocation15 + $0x4]] %s2829_s7  ;;  %s2841_s29 = smov 512  }
  0x50   :  { %100 = sst [smem:[#allocation15 + $0x5]] %s2840_s5  ;;  %s2842_s9 = smov 4  }
  0x51   :  { %s2318_s28 = sshll.u32 %s78_s25, 26  ;;  %102 = sst [smem:[#allocation15 + $0x6]] %s2841_s29 }
  0x52   :  { %s2319_s30 = sadd.s32 134217728, %s2318_s28  ;;  %104 = sst [smem:[#allocation15 + $0x7]] %s2837_s14 }
  0x53   :  { %106 = sst [smem:[#allocation15 + $0x8]] %s2842_s9  ;;  %s2843_s0 = smov [#allocation4]  }
  0x54   :  { %s2844_s10 = smov [#allocation14]   ;;  %s2772_s15 = scalar_lea.hbm %s3248_s4, 8192 }
  0x55   :  { %108 = dma.general %s3247_s3, 32768, %s87_s27, %s2843_s0, %s2844_s10, [#allocation15], %s2319_s30, 0  }
  0x56   :  { %v2534_v1 = vld [vmem:[#allocation8 + $0x4] ss:$8 sps:$4 sm:$0xff]   ;;  %v2536_v2 = vld [vmem:[#allocation8] ss:$8 sps:$4 sm:$0xff]   ;;  %v2537_v3 = vld [vmem:[#allocation8 + $0x14] ss:$8 sps:$4 sm:$0xff]   ;;  %p2773_p4 = scmp.ne.s32.totalorder %s3248_s4, %s2772_s15  ;;  %p2776_p5 = scmp.lt.u32.totalorder %s2772_s15, %s3248_s4 }
  0x57   :  { %231 = vmatprep.subr.bf16.mxu0 %v2534_v1  ;;  %v2539_v4 = vld [vmem:[#allocation8 + $0x10] ss:$8 sps:$4 sm:$0xff]   ;;  %v2540_v5 = vld [vmem:[#allocation8 + $0x24] ss:$8 sps:$4 sm:$0xff]   ;;  %v2542_v6 = vld [vmem:[#allocation8 + $0x20] ss:$8 sps:$4 sm:$0xff]  }
  0x58   :  { %232 = vmatpush1.bf16.msra.mxu0 %v2536_v2  ;;  %v2543_v7 = vld [vmem:[#allocation8 + $0x34] ss:$8 sps:$4 sm:$0xff]   ;;  %v2545_v8 = vld [vmem:[#allocation8 + $0x30] ss:$8 sps:$4 sm:$0xff]   ;;  %v2546_v9 = vld [vmem:[#allocation8 + $0x44] ss:$8 sps:$4 sm:$0xff]   ;;  %p2778_p6 = pnand %p2776_p5, %p2773_p4 }
  0x59   :  { %233 = vmatprep.subr.bf16.mxu0 %v2537_v3  ;;  %v2548_v10 = vld [vmem:[#allocation8 + $0x40] ss:$8 sps:$4 sm:$0xff]   ;;  %v2549_v11 = vld [vmem:[#allocation8 + $0x54] ss:$8 sps:$4 sm:$0xff]   ;;  %v2551_v12 = vld [vmem:[#allocation8 + $0x50] ss:$8 sps:$4 sm:$0xff]  }
  0x5a   :  { %v2552_v13 = vld [vmem:[#allocation8 + $0x64] ss:$8 sps:$4 sm:$0xff]   ;;  %v2554_v14 = vld [vmem:[#allocation8 + $0x60] ss:$8 sps:$4 sm:$0xff]   ;;  %v2555_v15 = vld [vmem:[#allocation8 + $0x74] ss:$8 sps:$4 sm:$0xff]  }
  0x5b   :  { %v2557_v16 = vld [vmem:[#allocation8 + $0x70] ss:$8 sps:$4 sm:$0xff]   ;;  %v2558_v19 = vld [vmem:[#allocation10 + $0x4] ss:$16 sps:$4 sm:$0xff]   ;;  %v2562_v20 = vld [vmem:[#allocation10 + $0xc] ss:$16 sps:$4 sm:$0xff]  }
  0x5c   :  { %234 = vmatpush1.bf16.msra.mxu0 %v2539_v4  ;;  %v121_v17 = vld [vmem:[#allocation5] sm:$0xff]  ;;  %v2563_v22 = vld [vmem:[#allocation10] ss:$16 sps:$4 sm:$0xff]   ;;  %781 = vmatprep.subr.bf16.mxu1 %v2558_v19  ;;  %v2564_v23 = vld [vmem:[#allocation10 + $0x24] ss:$16 sps:$4 sm:$0xff]   ;;  %v141_v19 = vlaneseq  ;;  %s2846_s3 = smov [#allocation3]  }
  0x5d   :  { %235 = vmatprep.subr.bf16.mxu0 %v2540_v5  ;;  %v139_v18 = vpack.c.bf16 %v121_v17, %v121_v17  ;;  %v2560_v21 = vld [vmem:[#allocation10 + $0x8] ss:$16 sps:$4 sm:$0xff]   ;;  %782 = vmatpush1.bf16.msra.mxu1 %v2563_v22  ;;  %v2568_v24 = vld [vmem:[#allocation10 + $0x2c] ss:$16 sps:$4 sm:$0xff]   ;;  %v2569_v26 = vld [vmem:[#allocation10 + $0x20] ss:$16 sps:$4 sm:$0xff]  }
  0x5e   :  { %v2566_v25 = vld [vmem:[#allocation10 + $0x28] ss:$16 sps:$4 sm:$0xff]   ;;  %783 = vmatprep.subr.bf16.mxu1 %v2564_v23  ;;  %v2570_v27 = vld [vmem:[#allocation10 + $0x44] ss:$16 sps:$4 sm:$0xff]   ;;  %v2574_v28 = vld [vmem:[#allocation10 + $0x4c] ss:$16 sps:$4 sm:$0xff]  }
  0x5f   :  { %v2572_v29 = vld [vmem:[#allocation10 + $0x48] ss:$16 sps:$4 sm:$0xff]   ;;  %v2575_v30 = vld [vmem:[#allocation10 + $0x40] ss:$16 sps:$4 sm:$0xff]   ;;  %v2576_v31 = vld [vmem:[#allocation10 + $0x64] ss:$16 sps:$4 sm:$0xff]  }
  0x60   :  { %236 = vmatpush1.bf16.msra.mxu0 %v2542_v6  ;;  %v2580_v32 = vld [vmem:[#allocation10 + $0x6c] ss:$16 sps:$4 sm:$0xff]   ;;  %v2578_v33 = vld [vmem:[#allocation10 + $0x68] ss:$16 sps:$4 sm:$0xff]   ;;  %v2581_v34 = vld [vmem:[#allocation10 + $0x60] ss:$16 sps:$4 sm:$0xff]  }
  0x61   :  { %237 = vmatprep.subr.bf16.mxu0 %v2543_v7  ;;  %784 = vmatpush1.bf16.msra.mxu1 %v2569_v26  ;;  %v2582_v35 = vld [vmem:[#allocation10 + $0x84] ss:$16 sps:$4 sm:$0xff]   ;;  %v2586_v36 = vld [vmem:[#allocation10 + $0x8c] ss:$16 sps:$4 sm:$0xff]   ;;  %v2584_v37 = vld [vmem:[#allocation10 + $0x88] ss:$16 sps:$4 sm:$0xff]  }
  0x62   :  { %785 = vmatprep.subr.bf16.mxu1 %v2570_v27  ;;  %v2587_v38 = vld [vmem:[#allocation10 + $0x80] ss:$16 sps:$4 sm:$0xff]   ;;  %v2588_v39 = vld [vmem:[#allocation10 + $0xa4] ss:$16 sps:$4 sm:$0xff]   ;;  %v2592_v40 = vld [vmem:[#allocation10 + $0xac] ss:$16 sps:$4 sm:$0xff]  }
  0x63   :  { %v2590_v41 = vld [vmem:[#allocation10 + $0xa8] ss:$16 sps:$4 sm:$0xff]   ;;  %v2593_v42 = vld [vmem:[#allocation10 + $0xa0] ss:$16 sps:$4 sm:$0xff]   ;;  %v2594_v43 = vld [vmem:[#allocation10 + $0xc4] ss:$16 sps:$4 sm:$0xff]  }
  0x64   :  { %238 = vmatpush1.bf16.msra.mxu0 %v2545_v8  ;;  %v2598_v44 = vld [vmem:[#allocation10 + $0xcc] ss:$16 sps:$4 sm:$0xff]   ;;  %v2596_v45 = vld [vmem:[#allocation10 + $0xc8] ss:$16 sps:$4 sm:$0xff]   ;;  %v2599_v46 = vld [vmem:[#allocation10 + $0xc0] ss:$16 sps:$4 sm:$0xff]  }
  0x65   :  { %239 = vmatprep.subr.bf16.mxu0 %v2546_v9  ;;  %786 = vmatpush1.bf16.msra.mxu1 %v2575_v30  ;;  %v2600_v47 = vld [vmem:[#allocation10 + $0xe4] ss:$16 sps:$4 sm:$0xff]   ;;  %v2604_v48 = vld [vmem:[#allocation10 + $0xec] ss:$16 sps:$4 sm:$0xff]   ;;  %v2602_v49 = vld [vmem:[#allocation10 + $0xe8] ss:$16 sps:$4 sm:$0xff]  }
  0x66   :  { %787 = vmatprep.subr.bf16.mxu1 %v2576_v31  ;;  %v2605_v50 = vld [vmem:[#allocation10 + $0xe0] ss:$16 sps:$4 sm:$0xff]   ;;  %v2606_v51 = vld [vmem:[#allocation10 + $0x104] ss:$16 sps:$4 sm:$0xff]   ;;  %v2610_v52 = vld [vmem:[#allocation10 + $0x10c] ss:$16 sps:$4 sm:$0xff]  }
  0x67   :  { %v2608_v53 = vld [vmem:[#allocation10 + $0x108] ss:$16 sps:$4 sm:$0xff]   ;;  %v2611_v54 = vld [vmem:[#allocation10 + $0x100] ss:$16 sps:$4 sm:$0xff]   ;;  %v2612_v55 = vld [vmem:[#allocation10 + $0x124] ss:$16 sps:$4 sm:$0xff]  }
  0x68   :  { %240 = vmatpush1.bf16.msra.mxu0 %v2548_v10  ;;  %v2614_v56 = vld [vmem:[#allocation10 + $0x128] ss:$16 sps:$4 sm:$0xff]   ;;  %v2616_v57 = vld [vmem:[#allocation10 + $0x12c] ss:$16 sps:$4 sm:$0xff]   ;;  %v2617_v58 = vld [vmem:[#allocation10 + $0x120] ss:$16 sps:$4 sm:$0xff]  }
  0x69   :  { %241 = vmatprep.subr.bf16.mxu0 %v2549_v11  ;;  %788 = vmatpush1.bf16.msra.mxu1 %v2581_v34  ;;  %v2618_v59 = vld [vmem:[#allocation10 + $0x144] ss:$16 sps:$4 sm:$0xff]   ;;  %v2622_v60 = vld [vmem:[#allocation10 + $0x14c] ss:$16 sps:$4 sm:$0xff]   ;;  %v2620_v61 = vld [vmem:[#allocation10 + $0x148] ss:$16 sps:$4 sm:$0xff]  }
  0x6a   :  { %789 = vmatprep.subr.bf16.mxu1 %v2582_v35  ;;  %v2623_v62 = vld [vmem:[#allocation10 + $0x140] ss:$16 sps:$4 sm:$0xff]   ;;  %v2624_v63 = vld [vmem:[#allocation10 + $0x164] ss:$16 sps:$4 sm:$0xff]   ;;  %v2628_v0 = vld [vmem:[#allocation10 + $0x16c] ss:$16 sps:$4 sm:$0xff]  }
  0x6b   :  { %v2626_v1 = vld [vmem:[#allocation10 + $0x168] ss:$16 sps:$4 sm:$0xff]   ;;  %v2629_v2 = vld [vmem:[#allocation10 + $0x160] ss:$16 sps:$4 sm:$0xff]   ;;  %v2630_v3 = vld [vmem:[#allocation10 + $0x184] ss:$16 sps:$4 sm:$0xff]  }
  0x6c   :  { %242 = vmatpush1.bf16.msra.mxu0 %v2551_v12  ;;  %v2634_v4 = vld [vmem:[#allocation10 + $0x18c] ss:$16 sps:$4 sm:$0xff]   ;;  %v2632_v5 = vld [vmem:[#allocation10 + $0x188] ss:$16 sps:$4 sm:$0xff]   ;;  %v2635_v6 = vld [vmem:[#allocation10 + $0x180] ss:$16 sps:$4 sm:$0xff]  }
  0x6d   :  { %243 = vmatprep.subr.bf16.mxu0 %v2552_v13  ;;  %790 = vmatpush1.bf16.msra.mxu1 %v2587_v38  ;;  %v2636_v7 = vld [vmem:[#allocation10 + $0x1a4] ss:$16 sps:$4 sm:$0xff]   ;;  %v2640_v8 = vld [vmem:[#allocation10 + $0x1ac] ss:$16 sps:$4 sm:$0xff]   ;;  %v2638_v9 = vld [vmem:[#allocation10 + $0x1a8] ss:$16 sps:$4 sm:$0xff]  }
  0x6e   :  { %791 = vmatprep.subr.bf16.mxu1 %v2588_v39  ;;  %v2641_v10 = vld [vmem:[#allocation10 + $0x1a0] ss:$16 sps:$4 sm:$0xff]   ;;  %v2642_v11 = vld [vmem:[#allocation10 + $0x1c4] ss:$16 sps:$4 sm:$0xff]   ;;  %v2646_v12 = vld [vmem:[#allocation10 + $0x1cc] ss:$16 sps:$4 sm:$0xff]  }
  0x6f   :  { %v2644_v13 = vld [vmem:[#allocation10 + $0x1c8] ss:$16 sps:$4 sm:$0xff]   ;;  %s117_s7 = sshll.u32 %s2846_s3, 4  ;;  %s118_s7 = int_to_ptr.vmem [resolvable:$true] %s117_s7 }
  0x70   :  { %244 = vmatpush1.bf16.msra.mxu0 %v2554_v14  ;;  %v2647_v14 = vld [vmem:[#allocation10 + $0x1c0] ss:$16 sps:$4 sm:$0xff]   ;;  %v2650_v17 = vld [vmem:[#allocation10 + $0x1e8] ss:$16 sps:$4 sm:$0xff]  }
  0x71   :  { %245 = vmatprep.subr.bf16.mxu0 %v2555_v15  ;;  %792 = vmatpush1.bf16.msra.mxu1 %v2593_v42  ;;  %v2648_v15 = vld [vmem:[#allocation10 + $0x1e4] ss:$16 sps:$4 sm:$0xff]   ;;  %v138_v22 = vld [vmem:[#allocation11] ss:$8 sm:$0x3] }
  0x72   :  { %793 = vmatprep.subr.bf16.mxu1 %v2594_v43 }
  0x74   :  { %246 = vmatpush1.bf16.msra.mxu0 %v2557_v16  ;;  %v2652_v16 = vld [vmem:[#allocation10 + $0x1ec] ss:$16 sps:$4 sm:$0xff]  }
  0x75   :  { %822 = vmatprep.subr.bf16.mxu0 %v2562_v20  ;;  %794 = vmatpush1.bf16.msra.mxu1 %v2599_v46  ;;  %v2939_v20 = vshrl.u32 %v141_v19, 7  ;;  %v277_v19 = vld [vmem:[#allocation11 + $0x2] ss:$8 sm:$0x3] }
  0x76   :  { %795 = vmatprep.subr.bf16.mxu1 %v2600_v47 }
  0x77   :  { %264 = vmatmul.mubr.bf16.vlgmr.msra.gmra.mrb[0].mxu0 %v139_v18  ;;  %v2653_v18 = vld [vmem:[#allocation10 + $0x1e0] ss:$16 sps:$4 sm:$0xff]   ;;  %v2945_v23 = vsub.s32 1, %v2939_v20 }
  0x78   :  { %823 = vmatpush1.bf16.msra.mxu0 %v2560_v21  ;;  %v2942_v21 = vsub.s32 0, %v2939_v20 }
  0x79   :  { %824 = vmatprep.subr.bf16.mxu0 %v2568_v24  ;;  %796 = vmatpush1.bf16.msra.mxu1 %v2605_v50 }
  0x7a   :  { %797 = vmatprep.subr.bf16.mxu1 %v2606_v51  ;;  %v144_v24 = vrot.slane %v138_v22, %v2942_v21 }
  0x7c   :  { %825 = vmatpush1.bf16.msra.mxu0 %v2566_v25  ;;  %v148_v25 = vrot.slane %v138_v22, %v2945_v23 }
  0x7d   :  { %826 = vmatprep.subr.bf16.mxu0 %v2574_v28  ;;  %798 = vmatpush1.bf16.msra.mxu1 %v2611_v54 }
  0x7e   :  { %799 = vmatprep.subr.bf16.mxu1 %v2612_v55 }
  0x80   :  { %827 = vmatpush1.bf16.msra.mxu0 %v2572_v29 }
  0x81   :  { %828 = vmatprep.subr.bf16.mxu0 %v2580_v32  ;;  %800 = vmatpush1.bf16.msra.mxu1 %v2617_v58 }
  0x82   :  { %801 = vmatprep.subr.bf16.mxu1 %v2618_v59 }
  0x84   :  { %829 = vmatpush1.bf16.msra.mxu0 %v2578_v33 }
  0x85   :  { %830 = vmatprep.subr.bf16.mxu0 %v2586_v36  ;;  %802 = vmatpush1.bf16.msra.mxu1 %v2623_v62 }
  0x86   :  { %803 = vmatprep.subr.bf16.mxu1 %v2624_v63 }
  0x88   :  { %831 = vmatpush1.bf16.msra.mxu0 %v2584_v37 }
  0x89   :  { %832 = vmatprep.subr.bf16.mxu0 %v2592_v40  ;;  %804 = vmatpush1.bf16.msra.mxu1 %v2629_v2 }
  0x8a   :  { %805 = vmatprep.subr.bf16.mxu1 %v2630_v3 }
  0x8c   :  { %833 = vmatpush1.bf16.msra.mxu0 %v2590_v41 }
  0x8d   :  { %834 = vmatprep.subr.bf16.mxu0 %v2598_v44  ;;  %806 = vmatpush1.bf16.msra.mxu1 %v2635_v6 }
  0x8e   :  { %807 = vmatprep.subr.bf16.mxu1 %v2636_v7 }
  0x90   :  { %835 = vmatpush1.bf16.msra.mxu0 %v2596_v45 }
  0x91   :  { %836 = vmatprep.subr.bf16.mxu0 %v2604_v48  ;;  %808 = vmatpush1.bf16.msra.mxu1 %v2641_v10 }
  0x92   :  { %809 = vmatprep.subr.bf16.mxu1 %v2642_v11 }
  0x94   :  { %837 = vmatpush1.bf16.msra.mxu0 %v2602_v49 }
  0x95   :  { %838 = vmatprep.subr.bf16.mxu0 %v2610_v52  ;;  %810 = vmatpush1.bf16.msra.mxu1 %v2647_v14 }
  0x96   :  { %811 = vmatprep.subr.bf16.mxu1 %v2648_v15 }
  0x98   :  { %839 = vmatpush1.bf16.msra.mxu0 %v2608_v53 }
  0x99   :  { %840 = vmatprep.subr.bf16.mxu0 %v2616_v57  ;;  %812 = vmatpush1.bf16.msra.mxu1 %v2653_v18 }
  0x9c   :  { %841 = vmatpush1.bf16.msra.mxu0 %v2614_v56 }
  0x9d   :  { %842 = vmatprep.subr.bf16.mxu0 %v2622_v60 }
  0xa0   :  { %843 = vmatpush1.bf16.msra.mxu0 %v2620_v61 }
  0xa1   :  { %844 = vmatprep.subr.bf16.mxu0 %v2628_v0 }
  0xa4   :  { %845 = vmatpush1.bf16.msra.mxu0 %v2626_v1 }
  0xa5   :  { %846 = vmatprep.subr.bf16.mxu0 %v2634_v4  ;;  %v275_v4 = vld [vmem:[#allocation11 + $0x1] ss:$8 sm:$0x3] }
  0xa6   :  { %v319_v7 = vrot.slane %v275_v4, %v2942_v21 }
  0xa8   :  { %847 = vmatpush1.bf16.msra.mxu0 %v2632_v5  ;;  %v2845_v5 = vmov 1966171168  }
  0xa9   :  { %848 = vmatprep.subr.bf16.mxu0 %v2640_v8  ;;  %v334_v6 = vunpack.c.l.s4 %v2845_v5  ;;  %v323_v8 = vrot.slane %v275_v4, %v2945_v23 }
  0xab   :  { %v335_v10 = vunpack.c.0.s8 %v334_v6 }
  0xac   :  { %849 = vmatpush1.bf16.msra.mxu0 %v2638_v9 }
  0xad   :  { %850 = vmatprep.subr.bf16.mxu0 %v2646_v12 }
  0xb0   :  { %851 = vmatpush1.bf16.msra.mxu0 %v2644_v13 }
  0xb1   :  { %852 = vmatprep.subr.bf16.mxu0 %v2652_v16  ;;  %v2952_v16 = vsub.s32 %v335_v10, %v2939_v20 }
  0xb4   :  { %853 = vmatpush1.bf16.msra.mxu0 %v2650_v17 }
 0x14a   :  { %v265_v26 = vpop.f32.mrb[0].mxu0 }
 0x14b   :  { %v266_v27 = vadd.f32 %v265_v26, %v144_v24  ;;  %v267_v28 = vpop.f32.mrb[1].mxu0 }
 0x14c   :  { %v268_v29 = vadd.f32 %v267_v28, %v148_v25  ;;  %v269_v30 = vpop.f32.mrb[2].mxu0 }
 0x14d   :  { %v272_v31 = vmax.f32 %v266_v27, 0.0  ;;  %v270_v32 = vpop.f32.mrb[3].mxu0 }
 0x14e   :  { %v273_v33 = vmax.f32 %v268_v29, 0.0 }
 0x14f   :  { %v278_v34 = vrot.slane %v272_v31, 4 }
 0x150   :  { %v284_v35 = vrot.slane %v273_v33, 4 }
 0x151   :  { %v279_v36 = vadd.f32 %v278_v34, %v272_v31 }
 0x152   :  { %v285_v37 = vadd.f32 %v284_v35, %v273_v33 }
 0x153   :  { %v280_v38 = vrot.slane %v279_v36, 2 }
 0x154   :  { %v286_v39 = vrot.slane %v285_v37, 2 }
 0x155   :  { %v281_v40 = vadd.f32 %v280_v38, %v279_v36 }
 0x156   :  { %v287_v41 = vadd.f32 %v286_v39, %v285_v37 }
 0x157   :  { %v282_v42 = vrot.slane %v281_v40, 1 }
 0x158   :  { %v288_v43 = vrot.slane %v287_v41, 1 }
 0x159   :  { %v283_v44 = vadd.f32 %v282_v42, %v281_v40 }
 0x15a   :  { %v289_v45 = vadd.f32 %v288_v43, %v287_v41 }
 0x15b   :  { %v291_v46 = vmul.f32 0.125, %v283_v44 }
 0x15c   :  { %v292_v47 = vmul.f32 0.125, %v289_v45 }
 0x15d   :  { %v293_v48 = vsub.f32 %v272_v31, %v291_v46 }
 0x15e   :  { %v294_v49 = vsub.f32 %v273_v33, %v292_v47 }
 0x15f   :  { %v295_v50 = vmul.f32 %v293_v48, %v293_v48 }
 0x160   :  { %v296_v51 = vmul.f32 %v294_v49, %v294_v49 }
 0x161   :  { %v297_v52 = vrot.slane %v295_v50, 4 }
 0x162   :  { %v303_v53 = vrot.slane %v296_v51, 4 }
 0x163   :  { %v298_v54 = vadd.f32 %v297_v52, %v295_v50 }
 0x164   :  { %v304_v55 = vadd.f32 %v303_v53, %v296_v51 }
 0x165   :  { %v299_v56 = vrot.slane %v298_v54, 2 }
 0x166   :  { %v305_v57 = vrot.slane %v304_v55, 2 }
 0x167   :  { %v300_v58 = vadd.f32 %v299_v56, %v298_v54 }
 0x168   :  { %v306_v59 = vadd.f32 %v305_v57, %v304_v55 }
 0x169   :  { %v301_v60 = vrot.slane %v300_v58, 1 }
 0x16a   :  { %v307_v61 = vrot.slane %v306_v59, 1 }
 0x16b   :  { %v302_v62 = vadd.f32 %v301_v60, %v300_v58 }
 0x16c   :  { %v308_v63 = vadd.f32 %v307_v61, %v306_v59 }
 0x16d   :  { %v309_v0 = vmul.f32 0.125, %v302_v62 }
 0x16e   :  { %v310_v1 = vmul.f32 0.125, %v308_v63 }
 0x16f   :  { %v311_v2 = vadd.f32 1e-05, %v309_v0 }
 0x170   :  { %v312_v3 = vadd.f32 1e-05, %v310_v1 }
 0x171   :  { %2654 = vrsqrt.f32 %v311_v2 }
 0x172   :  { %2656 = vrsqrt.f32 %v312_v3 }
 0x17b   :  { %v2655_v9 = vpop.eup %2654 }
 0x17c   :  { %v2657_v11 = vpop.eup %2656  ;;  %v326_v12 = vmul.f32 %v2655_v9, %v319_v7 }
 0x17d   :  { %v327_v13 = vmul.f32 %v2657_v11, %v323_v8 }
 0x17e   :  { %v328_v14 = vmul.f32 %v326_v12, %v291_v46  ;;  %v352_v25 = vrot.slane %v326_v12, %v2942_v21 }
 0x17f   :  { %v329_v15 = vmul.f32 %v327_v13, %v292_v47  ;;  %v356_v24 = vrot.slane %v327_v13, %v2942_v21 }
 0x180   :  { %v357_v29 = vmul.f32 %v352_v25, %v272_v31 }
 0x181   :  { %v332_v17 = vcombine.low %v328_v14, %v329_v15  ;;  %v358_v27 = vmul.f32 %v356_v24, %v273_v33 }
 0x183   :  { %v339_v18 = vrot.slane %v332_v17, %v2952_v16 }
 0x185   :  { %v346_v22 = vrot.slane %v339_v18, %v2952_v16 }
 0x187   :  { %v348_v26 = vsub.f32 %v277_v19, %v346_v22 }
 0x189   :  { %v367_v28 = vrot.slane %v348_v26, %v2945_v23  ;;  %v363_v30 = vrot.slane %v348_v26, %v2942_v21 }
 0x18b   :  { %v371_v32 = vadd.f32 %v367_v28, %v358_v27  ;;  %v370_v34 = vadd.f32 %v363_v30, %v357_v29 }
 0x18d   :  { %v439_v35 = vpack.c.bf16 %v371_v32, %v371_v32  ;;  %v438_v36 = vpack.c.bf16 %v370_v34, %v370_v34 }
 0x18f   :  { %813 = vmatprep.mubr.bf16.mxu1 %v439_v35  ;;  %854 = vmatprep.mubr.bf16.mxu0 %v439_v35 }
 0x190   :  { %814 = vmatmul.mubr.bf16.vlgmr.msra.gmra.mrb[0].mxu1 %v438_v36  ;;  %855 = vmatmul.mubr.bf16.vlgmr.msra.gmra.mrb[4].mxu0 %v438_v36 }
 0x191   :  { %2781 = shalt.err (!%p2778_p6)  }
 0x192   :  { %s2782_s20 = scalar_lea.vmem %s118_s7, 8192  ;;  %p2787_p8 = scmp.lt.s32.totalorder %s118_s7, %s118_s7 }
 0x193   :  { %p2783_p7 = scmp.ne.s32.totalorder %s118_s7, %s2782_s20  ;;  %p2788_p9 = scmp.lt.s32.totalorder %s2782_s20, %s2782_s20 }
 0x195   :  { %p2789_p10 = por %p2788_p9, %p2787_p8 }
 0x197   :  { %p2790_p11 = pnand %p2789_p10, %p2783_p7 }
 0x199   :  { %2793 = shalt.err (!%p2790_p11)  }
 0x19a   :  { %120 = dma.hbm_to_vmem [thread:$0]  %s3248_s4, 8192, %s118_s7, [#allocation4 + $0x1]  ;;  %v2973_v31 = vsub.s32 2, %v2939_v20  ;;  %v437_v33 = vld [vmem:[#allocation11 + $0x3] ss:$8 sm:$0xf] }
 0x19b   :  { %v2976_v37 = vsub.s32 3, %v2939_v20  ;;  %v444_v38 = vrot.slane %v437_v33, %v2942_v21  ;;  %v448_v40 = vrot.slane %v437_v33, %v2945_v23 }
 0x19c   :  { %v452_v39 = vrot.slane %v437_v33, %v2973_v31 }
 0x19d   :  { %v456_v41 = vrot.slane %v437_v33, %v2976_v37 }
 0x263   :  { %v815_v42 = vpop.f32.mrb[0].mxu1  ;;  %v856_v43 = vpop.f32.mrb[4].mxu0 }
 0x264   :  { %v816_v44 = vadd.f32 %v815_v42, %v444_v38  ;;  %v857_v45 = vadd.f32 %v856_v43, %v452_v39  ;;  %v817_v46 = vpop.f32.mrb[1].mxu1  ;;  %v858_v47 = vpop.f32.mrb[5].mxu0 }
 0x265   :  { %v818_v48 = vadd.f32 %v817_v46, %v448_v40  ;;  %v859_v49 = vadd.f32 %v858_v47, %v456_v41  ;;  %v819_v50 = vpop.f32.mrb[2].mxu1  ;;  %v860_v51 = vpop.f32.mrb[6].mxu0 }
 0x266   :  { %v2982_v52 = vmax.f32 %v816_v44, 0.0  ;;  %v2984_v53 = vmax.f32 %v857_v45, 0.0  ;;  %v820_v54 = vpop.f32.mrb[3].mxu1  ;;  %v861_v55 = vpop.f32.mrb[7].mxu0 }
 0x267   :  { %v2986_v56 = vmax.f32 %v818_v48, 0.0  ;;  %v2988_v57 = vmax.f32 %v859_v49, 0.0 }
 0x268   :  { %v871_v58 = vrot.slane %v2982_v52, 4  ;;  %v883_v59 = vrot.slane %v2984_v53, 4 }
 0x269   :  { %v877_v60 = vrot.slane %v2986_v56, 4  ;;  %v889_v61 = vrot.slane %v2988_v57, 4 }
 0x26a   :  { %v872_v62 = vadd.f32 %v871_v58, %v2982_v52  ;;  %v884_v63 = vadd.f32 %v883_v59, %v2984_v53 }
 0x26b   :  { %v878_v0 = vadd.f32 %v877_v60, %v2986_v56  ;;  %v890_v1 = vadd.f32 %v889_v61, %v2988_v57 }
 0x26c   :  { %v873_v2 = vrot.slane %v872_v62, 2  ;;  %v885_v3 = vrot.slane %v884_v63, 2 }
 0x26d   :  { %v879_v4 = vrot.slane %v878_v0, 2  ;;  %v891_v5 = vrot.slane %v890_v1, 2 }
 0x26e   :  { %v874_v6 = vadd.f32 %v873_v2, %v872_v62  ;;  %v886_v7 = vadd.f32 %v885_v3, %v884_v63 }
 0x26f   :  { %v880_v8 = vadd.f32 %v879_v4, %v878_v0  ;;  %v892_v9 = vadd.f32 %v891_v5, %v890_v1 }
 0x270   :  { %v875_v10 = vrot.slane %v874_v6, 1  ;;  %v887_v11 = vrot.slane %v886_v7, 1 }
 0x271   :  { %v881_v12 = vrot.slane %v880_v8, 1  ;;  %v893_v13 = vrot.slane %v892_v9, 1 }
 0x272   :  { %v876_v14 = vadd.f32 %v875_v10, %v874_v6  ;;  %v888_v15 = vadd.f32 %v887_v11, %v886_v7 }
 0x273   :  { %v882_v17 = vadd.f32 %v881_v12, %v880_v8  ;;  %v894_v18 = vadd.f32 %v893_v13, %v892_v9  ;;  %v868_v8 = vld [vmem:[#allocation11 + $0x4] ss:$8 sm:$0xf] }
 0x274   :  { %v895_v19 = vmul.f32 0.125, %v876_v14  ;;  %v897_v22 = vmul.f32 0.125, %v888_v15  ;;  %v947_v9 = vrot.slane %v868_v8, %v2942_v21  ;;  %v955_v10 = vrot.slane %v868_v8, %v2973_v31 }
 0x275   :  { %v896_v24 = vmul.f32 0.125, %v882_v17  ;;  %v898_v25 = vmul.f32 0.125, %v894_v18  ;;  %v951_v11 = vrot.slane %v868_v8, %v2945_v23  ;;  %v959_v13 = vrot.slane %v868_v8, %v2976_v37 }
 0x276   :  { %v899_v26 = vsub.f32 %v2982_v52, %v895_v19  ;;  %v901_v27 = vsub.f32 %v2984_v53, %v897_v22 }
 0x277   :  { %v900_v28 = vsub.f32 %v2986_v56, %v896_v24  ;;  %v902_v29 = vsub.f32 %v2988_v57, %v898_v25 }
 0x278   :  { %v903_v30 = vmul.f32 %v899_v26, %v899_v26  ;;  %v905_v32 = vmul.f32 %v901_v27, %v901_v27 }
 0x279   :  { %v904_v34 = vmul.f32 %v900_v28, %v900_v28  ;;  %v906_v35 = vmul.f32 %v902_v29, %v902_v29 }
 0x27a   :  { %v907_v36 = vrot.slane %v903_v30, 4  ;;  %v919_v33 = vrot.slane %v905_v32, 4 }
 0x27b   :  { %v913_v38 = vrot.slane %v904_v34, 4  ;;  %v925_v39 = vrot.slane %v906_v35, 4 }
 0x27c   :  { %v908_v40 = vadd.f32 %v907_v36, %v903_v30  ;;  %v920_v41 = vadd.f32 %v919_v33, %v905_v32 }
 0x27d   :  { %v914_v42 = vadd.f32 %v913_v38, %v904_v34  ;;  %v926_v43 = vadd.f32 %v925_v39, %v906_v35 }
 0x27e   :  { %v909_v44 = vrot.slane %v908_v40, 2  ;;  %v921_v45 = vrot.slane %v920_v41, 2 }
 0x27f   :  { %v915_v46 = vrot.slane %v914_v42, 2  ;;  %v927_v47 = vrot.slane %v926_v43, 2 }
 0x280   :  { %v910_v48 = vadd.f32 %v909_v44, %v908_v40  ;;  %v922_v49 = vadd.f32 %v921_v45, %v920_v41 }
 0x281   :  { %v916_v50 = vadd.f32 %v915_v46, %v914_v42  ;;  %v928_v51 = vadd.f32 %v927_v47, %v926_v43  ;;  %v870_v43 = vld [vmem:[#allocation11 + $0x5] ss:$8 sm:$0xf] }
 0x282   :  { %v911_v54 = vrot.slane %v910_v48, 1  ;;  %v923_v55 = vrot.slane %v922_v49, 1 }
 0x283   :  { %v917_v58 = vrot.slane %v916_v50, 1  ;;  %v929_v59 = vrot.slane %v928_v51, 1 }
 0x284   :  { %v912_v60 = vadd.f32 %v911_v54, %v910_v48  ;;  %v924_v61 = vadd.f32 %v923_v55, %v922_v49 }
 0x285   :  { %v918_v62 = vadd.f32 %v917_v58, %v916_v50  ;;  %v930_v63 = vadd.f32 %v929_v59, %v928_v51 }
 0x286   :  { %v931_v0 = vmul.f32 0.125, %v912_v60  ;;  %v933_v1 = vmul.f32 0.125, %v924_v61 }
 0x287   :  { %v932_v2 = vmul.f32 0.125, %v918_v62  ;;  %v934_v3 = vmul.f32 0.125, %v930_v63 }
 0x288   :  { %v935_v4 = vadd.f32 1e-05, %v931_v0  ;;  %v937_v5 = vadd.f32 1e-05, %v933_v1 }
 0x289   :  { %v936_v6 = vadd.f32 1e-05, %v932_v2  ;;  %v938_v7 = vadd.f32 1e-05, %v934_v3 }
 0x28a   :  { %2658 = vrsqrt.f32 %v935_v4 }
 0x28b   :  { %2660 = vrsqrt.f32 %v937_v5 }
 0x28c   :  { %2662 = vrsqrt.f32 %v936_v6 }
 0x28d   :  { %2664 = vrsqrt.f32 %v938_v7 }
 0x294   :  { %v2659_v12 = vpop.eup %2658 }
 0x295   :  { %v2661_v14 = vpop.eup %2660  ;;  %v964_v15 = vmul.f32 %v2659_v12, %v947_v9 }
 0x296   :  { %v2663_v17 = vpop.eup %2662  ;;  %v966_v18 = vmul.f32 %v2661_v14, %v955_v10 }
 0x297   :  { %v2665_v26 = vpop.eup %2664  ;;  %v968_v27 = vmul.f32 %v964_v15, %v895_v19  ;;  %v965_v28 = vmul.f32 %v2663_v17, %v951_v11  ;;  %v1005_v40 = vrot.slane %v964_v15, %v2942_v21 }
 0x298   :  { %v970_v29 = vmul.f32 %v966_v18, %v897_v22  ;;  %v967_v30 = vmul.f32 %v2665_v26, %v959_v13  ;;  %v1013_v41 = vrot.slane %v966_v18, %v2942_v21 }
 0x299   :  { %v969_v32 = vmul.f32 %v965_v28, %v896_v24  ;;  %v1009_v42 = vrot.slane %v965_v28, %v2942_v21 }
 0x29a   :  { %v971_v34 = vmul.f32 %v967_v30, %v898_v25  ;;  %v1017_v19 = vrot.slane %v967_v30, %v2942_v21  ;;  %v1018_v25 = vmul.f32 %v1005_v40, %v2982_v52  ;;  %v1020_v44 = vmul.f32 %v1013_v41, %v2984_v53 }
 0x29b   :  { %v976_v35 = vcombine.low %v968_v27, %v969_v32  ;;  %v1019_v45 = vmul.f32 %v1009_v42, %v2986_v56 }
 0x29c   :  { %v977_v36 = vcombine.low %v970_v29, %v971_v34  ;;  %v1021_v46 = vmul.f32 %v1017_v19, %v2988_v57 }
 0x29d   :  { %v984_v33 = vrot.slane %v976_v35, %v2952_v16 }
 0x29e   :  { %v991_v38 = vrot.slane %v977_v36, %v2952_v16 }
 0x2a0   :  { %v992_v39 = vcombine.low %v984_v33, %v991_v38 }
 0x2a2   :  { %v999_v22 = vrot.slane %v992_v39, %v2952_v16 }
 0x2a4   :  { %v1001_v24 = vsub.f32 %v870_v43, %v999_v22 }
 0x2a6   :  { %v1026_v47 = vrot.slane %v1001_v24, %v2942_v21  ;;  %v1030_v48 = vrot.slane %v1001_v24, %v2945_v23  ;;  %v1034_v49 = vrot.slane %v1001_v24, %v2973_v31  ;;  %v1038_v50 = vrot.slane %v1001_v24, %v2976_v37 }
 0x2a8   :  { %v3021_v51 = vadd.f32 %v1026_v47, %v1018_v25  ;;  %v1044_v54 = vadd.f32 %v1030_v48, %v1019_v45  ;;  %v3023_v55 = vadd.f32 %v1034_v49, %v1020_v44  ;;  %v3025_v52 = vadd.f32 %v1038_v50, %v1021_v46 }
 0x2a9   :  { %2822 = dma.done.wait [#allocation4], 32768 }
 0x2aa   :  { %2823 = vsyncadd [#allocation4], 4294934528  ;;  %v3027_v53 = vpack.c.bf16 %v1044_v54, %v1044_v54  ;;  %v1052_v56 = vld [vmem:[#allocation2 + $0x8] sm:$0xff]  ;;  %v1054_v57 = vld [vmem:[#allocation2 + $0x18] sm:$0xff] }
 0x2ab   :  { %v1051_v58 = vld [vmem:[#allocation2] sm:$0xff]  ;;  %1356 = vmatprep.subr.bf16.mxu1 %v1052_v56  ;;  %1438 = vmatprep.subr.bf16.mxu0 %v1054_v57  ;;  %v1053_v59 = vld [vmem:[#allocation2 + $0x10] sm:$0xff]  ;;  %v1060_v60 = vld [vmem:[#allocation2 + $0x48] sm:$0xff] }
 0x2ac   :  { %1388 = vmatprep.mubr.bf16.mxu1 %v3027_v53  ;;  %1470 = vmatprep.mubr.bf16.mxu0 %v3027_v53  ;;  %v1062_v61 = vld [vmem:[#allocation2 + $0x58] sm:$0xff]  ;;  %v1059_v62 = vld [vmem:[#allocation2 + $0x40] sm:$0xff]  ;;  %v1061_v63 = vld [vmem:[#allocation2 + $0x50] sm:$0xff] }
 0x2ad   :  { %1357 = vmatpush1.bf16.msra.mxu1 %v1051_v58  ;;  %1439 = vmatpush1.bf16.msra.mxu0 %v1053_v59  ;;  %v1068_v0 = vld [vmem:[#allocation2 + $0x88] sm:$0xff]  ;;  %v1070_v1 = vld [vmem:[#allocation2 + $0x98] sm:$0xff]  ;;  %v1067_v2 = vld [vmem:[#allocation2 + $0x80] sm:$0xff] }
 0x2ae   :  { %1358 = vmatprep.subr.bf16.mxu1 %v1060_v60  ;;  %1440 = vmatprep.subr.bf16.mxu0 %v1062_v61  ;;  %v1069_v3 = vld [vmem:[#allocation2 + $0x90] sm:$0xff]  ;;  %v1076_v4 = vld [vmem:[#allocation2 + $0xc8] sm:$0xff]  ;;  %v1078_v5 = vld [vmem:[#allocation2 + $0xd8] sm:$0xff] }
 0x2af   :  { %v1075_v6 = vld [vmem:[#allocation2 + $0xc0] sm:$0xff]  ;;  %v1077_v7 = vld [vmem:[#allocation2 + $0xd0] sm:$0xff]  ;;  %v1084_v8 = vld [vmem:[#allocation2 + $0x108] sm:$0xff] }
 0x2b0   :  { %v1086_v9 = vld [vmem:[#allocation2 + $0x118] sm:$0xff]  ;;  %v1083_v10 = vld [vmem:[#allocation2 + $0x100] sm:$0xff]  ;;  %v1085_v11 = vld [vmem:[#allocation2 + $0x110] sm:$0xff] }
 0x2b1   :  { %1359 = vmatpush1.bf16.msra.mxu1 %v1059_v62  ;;  %1441 = vmatpush1.bf16.msra.mxu0 %v1061_v63  ;;  %v1092_v12 = vld [vmem:[#allocation2 + $0x148] sm:$0xff]  ;;  %v1094_v13 = vld [vmem:[#allocation2 + $0x158] sm:$0xff]  ;;  %v1091_v14 = vld [vmem:[#allocation2 + $0x140] sm:$0xff] }
 0x2b2   :  { %1360 = vmatprep.subr.bf16.mxu1 %v1068_v0  ;;  %1442 = vmatprep.subr.bf16.mxu0 %v1070_v1  ;;  %v1093_v15 = vld [vmem:[#allocation2 + $0x150] sm:$0xff]  ;;  %v1100_v17 = vld [vmem:[#allocation2 + $0x188] sm:$0xff]  ;;  %v1102_v18 = vld [vmem:[#allocation2 + $0x198] sm:$0xff] }
 0x2b3   :  { %v1099_v26 = vld [vmem:[#allocation2 + $0x180] sm:$0xff]  ;;  %v1101_v27 = vld [vmem:[#allocation2 + $0x190] sm:$0xff]  ;;  %v1108_v28 = vld [vmem:[#allocation2 + $0x1c8] sm:$0xff] }
 0x2b4   :  { %v1110_v29 = vld [vmem:[#allocation2 + $0x1d8] sm:$0xff]  ;;  %v1107_v30 = vld [vmem:[#allocation2 + $0x1c0] sm:$0xff]  ;;  %v1109_v32 = vld [vmem:[#allocation2 + $0x1d0] sm:$0xff] }
 0x2b5   :  { %1361 = vmatpush1.bf16.msra.mxu1 %v1067_v2  ;;  %1443 = vmatpush1.bf16.msra.mxu0 %v1069_v3  ;;  %v1116_v34 = vld [vmem:[#allocation2 + $0x208] sm:$0xff]  ;;  %v1118_v35 = vld [vmem:[#allocation2 + $0x218] sm:$0xff]  ;;  %v1115_v36 = vld [vmem:[#allocation2 + $0x200] sm:$0xff] }
 0x2b6   :  { %1362 = vmatprep.subr.bf16.mxu1 %v1076_v4  ;;  %1444 = vmatprep.subr.bf16.mxu0 %v1078_v5  ;;  %v1117_v33 = vld [vmem:[#allocation2 + $0x210] sm:$0xff]  ;;  %v1124_v38 = vld [vmem:[#allocation2 + $0x248] sm:$0xff]  ;;  %v1126_v39 = vld [vmem:[#allocation2 + $0x258] sm:$0xff]  ;;  %v3033_v4 = vpack.c.bf16 %v3021_v51, %v3021_v51 }
 0x2b7   :  { %v1123_v40 = vld [vmem:[#allocation2 + $0x240] sm:$0xff]  ;;  %v1125_v41 = vld [vmem:[#allocation2 + $0x250] sm:$0xff]  ;;  %v1132_v42 = vld [vmem:[#allocation2 + $0x288] sm:$0xff] }
 0x2b8   :  { %v1134_v43 = vld [vmem:[#allocation2 + $0x298] sm:$0xff]  ;;  %v1131_v19 = vld [vmem:[#allocation2 + $0x280] sm:$0xff]  ;;  %v1133_v22 = vld [vmem:[#allocation2 + $0x290] sm:$0xff] }
 0x2b9   :  { %1363 = vmatpush1.bf16.msra.mxu1 %v1075_v6  ;;  %1445 = vmatpush1.bf16.msra.mxu0 %v1077_v7  ;;  %v1140_v24 = vld [vmem:[#allocation2 + $0x2c8] sm:$0xff]  ;;  %v1142_v25 = vld [vmem:[#allocation2 + $0x2d8] sm:$0xff]  ;;  %v1139_v44 = vld [vmem:[#allocation2 + $0x2c0] sm:$0xff] }
 0x2ba   :  { %1364 = vmatprep.subr.bf16.mxu1 %v1084_v8  ;;  %1446 = vmatprep.subr.bf16.mxu0 %v1086_v9  ;;  %v1141_v45 = vld [vmem:[#allocation2 + $0x2d0] sm:$0xff]  ;;  %v1148_v46 = vld [vmem:[#allocation2 + $0x308] sm:$0xff]  ;;  %v1150_v47 = vld [vmem:[#allocation2 + $0x318] sm:$0xff]  ;;  %v3037_v9 = vpack.c.bf16 %v3025_v52, %v3025_v52 }
 0x2bb   :  { %v1147_v48 = vld [vmem:[#allocation2 + $0x300] sm:$0xff]  ;;  %v1149_v49 = vld [vmem:[#allocation2 + $0x310] sm:$0xff]  ;;  %v1156_v50 = vld [vmem:[#allocation2 + $0x348] sm:$0xff] }
 0x2bc   :  { %v1158_v54 = vld [vmem:[#allocation2 + $0x358] sm:$0xff]  ;;  %v1155_v56 = vld [vmem:[#allocation2 + $0x340] sm:$0xff]  ;;  %v1157_v57 = vld [vmem:[#allocation2 + $0x350] sm:$0xff] }
 0x2bd   :  { %1365 = vmatpush1.bf16.msra.mxu1 %v1083_v10  ;;  %1447 = vmatpush1.bf16.msra.mxu0 %v1085_v11  ;;  %v1164_v58 = vld [vmem:[#allocation2 + $0x388] sm:$0xff]  ;;  %v1166_v59 = vld [vmem:[#allocation2 + $0x398] sm:$0xff]  ;;  %v1163_v60 = vld [vmem:[#allocation2 + $0x380] sm:$0xff] }
 0x2be   :  { %1366 = vmatprep.subr.bf16.mxu1 %v1092_v12  ;;  %1448 = vmatprep.subr.bf16.mxu0 %v1094_v13  ;;  %v1165_v61 = vld [vmem:[#allocation2 + $0x390] sm:$0xff]  ;;  %v1172_v62 = vld [vmem:[#allocation2 + $0x3c8] sm:$0xff]  ;;  %v1174_v63 = vld [vmem:[#allocation2 + $0x3d8] sm:$0xff] }
 0x2bf   :  { %v1171_v0 = vld [vmem:[#allocation2 + $0x3c0] sm:$0xff]  ;;  %v1173_v1 = vld [vmem:[#allocation2 + $0x3d0] sm:$0xff]  ;;  %v1180_v2 = vld [vmem:[#allocation2 + $0x408] sm:$0xff] }
 0x2c0   :  { %v1182_v3 = vld [vmem:[#allocation2 + $0x418] sm:$0xff]  ;;  %v1179_v5 = vld [vmem:[#allocation2 + $0x400] sm:$0xff]  ;;  %v1181_v6 = vld [vmem:[#allocation2 + $0x410] sm:$0xff] }
 0x2c1   :  { %1367 = vmatpush1.bf16.msra.mxu1 %v1091_v14  ;;  %1449 = vmatpush1.bf16.msra.mxu0 %v1093_v15  ;;  %v1188_v7 = vld [vmem:[#allocation2 + $0x448] sm:$0xff]  ;;  %v1190_v8 = vld [vmem:[#allocation2 + $0x458] sm:$0xff]  ;;  %v1187_v51 = vld [vmem:[#allocation2 + $0x440] sm:$0xff] }
 0x2c2   :  { %1368 = vmatprep.subr.bf16.mxu1 %v1100_v17  ;;  %1450 = vmatprep.subr.bf16.mxu0 %v1102_v18  ;;  %v1189_v10 = vld [vmem:[#allocation2 + $0x450] sm:$0xff]  ;;  %v1196_v11 = vld [vmem:[#allocation2 + $0x488] sm:$0xff]  ;;  %v1198_v12 = vld [vmem:[#allocation2 + $0x498] sm:$0xff] }
 0x2c3   :  { %v1195_v52 = vld [vmem:[#allocation2 + $0x480] sm:$0xff]  ;;  %v1197_v13 = vld [vmem:[#allocation2 + $0x490] sm:$0xff]  ;;  %v1204_v14 = vld [vmem:[#allocation2 + $0x4c8] sm:$0xff] }
 0x2c4   :  { %v1206_v15 = vld [vmem:[#allocation2 + $0x4d8] sm:$0xff]  ;;  %v1203_v17 = vld [vmem:[#allocation2 + $0x4c0] sm:$0xff]  ;;  %v1205_v18 = vld [vmem:[#allocation2 + $0x4d0] sm:$0xff] }
 0x2c5   :  { %1369 = vmatpush1.bf16.msra.mxu1 %v1099_v26  ;;  %1451 = vmatpush1.bf16.msra.mxu0 %v1101_v27  ;;  %v1212_v26 = vld [vmem:[#allocation2 + $0x508] sm:$0xff]  ;;  %v1214_v27 = vld [vmem:[#allocation2 + $0x518] sm:$0xff] }
 0x2c6   :  { %1370 = vmatprep.subr.bf16.mxu1 %v1108_v28  ;;  %1452 = vmatprep.subr.bf16.mxu0 %v1110_v29  ;;  %v1211_v28 = vld [vmem:[#allocation2 + $0x500] sm:$0xff]  ;;  %v1213_v29 = vld [vmem:[#allocation2 + $0x510] sm:$0xff] }
 0x2c9   :  { %1371 = vmatpush1.bf16.msra.mxu1 %v1107_v30  ;;  %1453 = vmatpush1.bf16.msra.mxu0 %v1109_v32  ;;  %v1220_v30 = vld [vmem:[#allocation2 + $0x548] sm:$0xff]  ;;  %v1222_v32 = vld [vmem:[#allocation2 + $0x558] sm:$0xff] }
 0x2ca   :  { %1372 = vmatprep.subr.bf16.mxu1 %v1116_v34  ;;  %1454 = vmatprep.subr.bf16.mxu0 %v1118_v35  ;;  %v1219_v34 = vld [vmem:[#allocation2 + $0x540] sm:$0xff]  ;;  %v1221_v35 = vld [vmem:[#allocation2 + $0x550] sm:$0xff] }
 0x2cd   :  { %1373 = vmatpush1.bf16.msra.mxu1 %v1115_v36  ;;  %1455 = vmatpush1.bf16.msra.mxu0 %v1117_v33  ;;  %v1228_v36 = vld [vmem:[#allocation2 + $0x588] sm:$0xff]  ;;  %v1230_v33 = vld [vmem:[#allocation2 + $0x598] sm:$0xff] }
 0x2ce   :  { %1374 = vmatprep.subr.bf16.mxu1 %v1124_v38  ;;  %1456 = vmatprep.subr.bf16.mxu0 %v1126_v39  ;;  %v1227_v38 = vld [vmem:[#allocation2 + $0x580] sm:$0xff]  ;;  %v1229_v39 = vld [vmem:[#allocation2 + $0x590] sm:$0xff] }
 0x2d1   :  { %1375 = vmatpush1.bf16.msra.mxu1 %v1123_v40  ;;  %1457 = vmatpush1.bf16.msra.mxu0 %v1125_v41  ;;  %v1236_v40 = vld [vmem:[#allocation2 + $0x5c8] sm:$0xff]  ;;  %v1238_v41 = vld [vmem:[#allocation2 + $0x5d8] sm:$0xff] }
 0x2d2   :  { %1376 = vmatprep.subr.bf16.mxu1 %v1132_v42  ;;  %1458 = vmatprep.subr.bf16.mxu0 %v1134_v43  ;;  %v1235_v42 = vld [vmem:[#allocation2 + $0x5c0] sm:$0xff]  ;;  %v1237_v43 = vld [vmem:[#allocation2 + $0x5d0] sm:$0xff] }
 0x2d5   :  { %1377 = vmatpush1.bf16.msra.mxu1 %v1131_v19  ;;  %1459 = vmatpush1.bf16.msra.mxu0 %v1133_v22  ;;  %v1244_v19 = vld [vmem:[#allocation2 + $0x608] sm:$0xff]  ;;  %v1246_v22 = vld [vmem:[#allocation2 + $0x618] sm:$0xff] }
 0x2d6   :  { %1378 = vmatprep.subr.bf16.mxu1 %v1140_v24  ;;  %1460 = vmatprep.subr.bf16.mxu0 %v1142_v25  ;;  %v1243_v24 = vld [vmem:[#allocation2 + $0x600] sm:$0xff]  ;;  %v1245_v25 = vld [vmem:[#allocation2 + $0x610] sm:$0xff] }
 0x2d9   :  { %1379 = vmatpush1.bf16.msra.mxu1 %v1139_v44  ;;  %1461 = vmatpush1.bf16.msra.mxu0 %v1141_v45  ;;  %v1252_v44 = vld [vmem:[#allocation2 + $0x648] sm:$0xff]  ;;  %v1254_v45 = vld [vmem:[#allocation2 + $0x658] sm:$0xff] }
 0x2da   :  { %1380 = vmatprep.subr.bf16.mxu1 %v1148_v46  ;;  %1462 = vmatprep.subr.bf16.mxu0 %v1150_v47  ;;  %v1251_v46 = vld [vmem:[#allocation2 + $0x640] sm:$0xff]  ;;  %v1253_v47 = vld [vmem:[#allocation2 + $0x650] sm:$0xff] }
 0x2dd   :  { %1381 = vmatpush1.bf16.msra.mxu1 %v1147_v48  ;;  %1463 = vmatpush1.bf16.msra.mxu0 %v1149_v49  ;;  %v1260_v48 = vld [vmem:[#allocation2 + $0x688] sm:$0xff]  ;;  %v1262_v49 = vld [vmem:[#allocation2 + $0x698] sm:$0xff] }
 0x2de   :  { %1382 = vmatprep.subr.bf16.mxu1 %v1156_v50  ;;  %1464 = vmatprep.subr.bf16.mxu0 %v1158_v54  ;;  %v1259_v50 = vld [vmem:[#allocation2 + $0x680] sm:$0xff]  ;;  %v1261_v54 = vld [vmem:[#allocation2 + $0x690] sm:$0xff] }
 0x2e1   :  { %1383 = vmatpush1.bf16.msra.mxu1 %v1155_v56  ;;  %1465 = vmatpush1.bf16.msra.mxu0 %v1157_v57  ;;  %v1268_v56 = vld [vmem:[#allocation2 + $0x6c8] sm:$0xff]  ;;  %v1270_v57 = vld [vmem:[#allocation2 + $0x6d8] sm:$0xff] }
 0x2e2   :  { %1384 = vmatprep.subr.bf16.mxu1 %v1164_v58  ;;  %1466 = vmatprep.subr.bf16.mxu0 %v1166_v59  ;;  %v1267_v58 = vld [vmem:[#allocation2 + $0x6c0] sm:$0xff]  ;;  %v1269_v59 = vld [vmem:[#allocation2 + $0x6d0] sm:$0xff] }
 0x2e5   :  { %1385 = vmatpush1.bf16.msra.mxu1 %v1163_v60  ;;  %1467 = vmatpush1.bf16.msra.mxu0 %v1165_v61  ;;  %v1276_v60 = vld [vmem:[#allocation2 + $0x708] sm:$0xff]  ;;  %v1278_v61 = vld [vmem:[#allocation2 + $0x718] sm:$0xff] }
 0x2e6   :  { %1386 = vmatprep.subr.bf16.mxu1 %v1172_v62  ;;  %1468 = vmatprep.subr.bf16.mxu0 %v1174_v63  ;;  %v1275_v62 = vld [vmem:[#allocation2 + $0x700] sm:$0xff]  ;;  %v1277_v63 = vld [vmem:[#allocation2 + $0x710] sm:$0xff] }
 0x2e9   :  { %1387 = vmatpush1.bf16.msra.mxu1 %v1171_v0  ;;  %1469 = vmatpush1.bf16.msra.mxu0 %v1173_v1  ;;  %v1284_v0 = vld [vmem:[#allocation2 + $0x748] sm:$0xff]  ;;  %v1286_v1 = vld [vmem:[#allocation2 + $0x758] sm:$0xff] }
 0x2ea   :  { %1397 = vmatprep.subr.bf16.mxu1 %v1180_v2  ;;  %1479 = vmatprep.subr.bf16.mxu0 %v1182_v3  ;;  %v1283_v2 = vld [vmem:[#allocation2 + $0x740] sm:$0xff]  ;;  %v1285_v3 = vld [vmem:[#allocation2 + $0x750] sm:$0xff] }
 0x2ec   :  { %1389 = vmatmul.mubr.bf16.vlgmr.msra.gmra.mrb[4].mxu1 %v3033_v4  ;;  %1471 = vmatmul.mubr.bf16.vlgmr.msra.gmra.mrb[8].mxu0 %v3033_v4 }
 0x2ed   :  { %1398 = vmatpush1.bf16.msra.mxu1 %v1179_v5  ;;  %1480 = vmatpush1.bf16.msra.mxu0 %v1181_v6  ;;  %v1292_v5 = vld [vmem:[#allocation2 + $0x788] sm:$0xff]  ;;  %v1294_v6 = vld [vmem:[#allocation2 + $0x798] sm:$0xff] }
 0x2ee   :  { %1399 = vmatprep.subr.bf16.mxu1 %v1188_v7  ;;  %1481 = vmatprep.subr.bf16.mxu0 %v1190_v8  ;;  %v1291_v7 = vld [vmem:[#allocation2 + $0x780] sm:$0xff]  ;;  %v1293_v8 = vld [vmem:[#allocation2 + $0x790] sm:$0xff] }
 0x2ef   :  { %1429 = vmatprep.mubr.bf16.mxu1 %v3037_v9  ;;  %1511 = vmatprep.mubr.bf16.mxu0 %v3037_v9 }
 0x2f1   :  { %1400 = vmatpush1.bf16.msra.mxu1 %v1187_v51  ;;  %1482 = vmatpush1.bf16.msra.mxu0 %v1189_v10  ;;  %v1300_v51 = vld [vmem:[#allocation2 + $0x7c8] sm:$0xff]  ;;  %v1302_v10 = vld [vmem:[#allocation2 + $0x7d8] sm:$0xff] }
 0x2f2   :  { %1401 = vmatprep.subr.bf16.mxu1 %v1196_v11  ;;  %1483 = vmatprep.subr.bf16.mxu0 %v1198_v12  ;;  %v1299_v11 = vld [vmem:[#allocation2 + $0x7c0] sm:$0xff]  ;;  %v1301_v12 = vld [vmem:[#allocation2 + $0x7d0] sm:$0xff] }
 0x2f5   :  { %1402 = vmatpush1.bf16.msra.mxu1 %v1195_v52  ;;  %1484 = vmatpush1.bf16.msra.mxu0 %v1197_v13  ;;  %v1056_v52 = vld [vmem:[#allocation2 + $0x28] sm:$0xff]  ;;  %v1058_v13 = vld [vmem:[#allocation2 + $0x38] sm:$0xff] }
 0x2f6   :  { %1403 = vmatprep.subr.bf16.mxu1 %v1204_v14  ;;  %1485 = vmatprep.subr.bf16.mxu0 %v1206_v15  ;;  %v3045_v14 = vpack.c.bf16 %v3023_v55, %v3023_v55  ;;  %v1055_v15 = vld [vmem:[#allocation2 + $0x20] sm:$0xff]  ;;  %v1072_v55 = vld [vmem:[#allocation2 + $0xa8] sm:$0xff] }
 0x2f9   :  { %1404 = vmatpush1.bf16.msra.mxu1 %v1203_v17  ;;  %1486 = vmatpush1.bf16.msra.mxu0 %v1205_v18  ;;  %v1057_v17 = vld [vmem:[#allocation2 + $0x30] sm:$0xff]  ;;  %v1064_v18 = vld [vmem:[#allocation2 + $0x68] sm:$0xff] }
 0x2fa   :  { %1405 = vmatprep.subr.bf16.mxu1 %v1212_v26  ;;  %1487 = vmatprep.subr.bf16.mxu0 %v1214_v27  ;;  %v1066_v26 = vld [vmem:[#allocation2 + $0x78] sm:$0xff]  ;;  %v1063_v27 = vld [vmem:[#allocation2 + $0x60] sm:$0xff] }
 0x2fd   :  { %1406 = vmatpush1.bf16.msra.mxu1 %v1211_v28  ;;  %1488 = vmatpush1.bf16.msra.mxu0 %v1213_v29  ;;  %v1065_v28 = vld [vmem:[#allocation2 + $0x70] sm:$0xff]  ;;  %v1074_v29 = vld [vmem:[#allocation2 + $0xb8] sm:$0xff] }
 0x2fe   :  { %1407 = vmatprep.subr.bf16.mxu1 %v1220_v30  ;;  %1489 = vmatprep.subr.bf16.mxu0 %v1222_v32  ;;  %v1071_v30 = vld [vmem:[#allocation2 + $0xa0] sm:$0xff]  ;;  %v1073_v32 = vld [vmem:[#allocation2 + $0xb0] sm:$0xff] }
 0x301   :  { %1408 = vmatpush1.bf16.msra.mxu1 %v1219_v34  ;;  %1490 = vmatpush1.bf16.msra.mxu0 %v1221_v35  ;;  %v1080_v34 = vld [vmem:[#allocation2 + $0xe8] sm:$0xff]  ;;  %v1082_v35 = vld [vmem:[#allocation2 + $0xf8] sm:$0xff] }
 0x302   :  { %1409 = vmatprep.subr.bf16.mxu1 %v1228_v36  ;;  %1491 = vmatprep.subr.bf16.mxu0 %v1230_v33  ;;  %v1079_v36 = vld [vmem:[#allocation2 + $0xe0] sm:$0xff]  ;;  %v1081_v33 = vld [vmem:[#allocation2 + $0xf0] sm:$0xff] }
 0x305   :  { %1410 = vmatpush1.bf16.msra.mxu1 %v1227_v38  ;;  %1492 = vmatpush1.bf16.msra.mxu0 %v1229_v39  ;;  %v1088_v38 = vld [vmem:[#allocation2 + $0x128] sm:$0xff]  ;;  %v1090_v39 = vld [vmem:[#allocation2 + $0x138] sm:$0xff] }
 0x306   :  { %1411 = vmatprep.subr.bf16.mxu1 %v1236_v40  ;;  %1493 = vmatprep.subr.bf16.mxu0 %v1238_v41  ;;  %v1089_v40 = vld [vmem:[#allocation2 + $0x130] sm:$0xff]  ;;  %v1096_v41 = vld [vmem:[#allocation2 + $0x168] sm:$0xff] }
 0x309   :  { %1412 = vmatpush1.bf16.msra.mxu1 %v1235_v42  ;;  %1494 = vmatpush1.bf16.msra.mxu0 %v1237_v43  ;;  %v1098_v42 = vld [vmem:[#allocation2 + $0x178] sm:$0xff]  ;;  %v1095_v43 = vld [vmem:[#allocation2 + $0x160] sm:$0xff] }
 0x30a   :  { %1413 = vmatprep.subr.bf16.mxu1 %v1244_v19  ;;  %1495 = vmatprep.subr.bf16.mxu0 %v1246_v22  ;;  %v1097_v19 = vld [vmem:[#allocation2 + $0x170] sm:$0xff]  ;;  %v1104_v22 = vld [vmem:[#allocation2 + $0x1a8] sm:$0xff] }
 0x30d   :  { %1414 = vmatpush1.bf16.msra.mxu1 %v1243_v24  ;;  %1496 = vmatpush1.bf16.msra.mxu0 %v1245_v25  ;;  %v1106_v24 = vld [vmem:[#allocation2 + $0x1b8] sm:$0xff]  ;;  %v1103_v25 = vld [vmem:[#allocation2 + $0x1a0] sm:$0xff] }
 0x30e   :  { %1415 = vmatprep.subr.bf16.mxu1 %v1252_v44  ;;  %1497 = vmatprep.subr.bf16.mxu0 %v1254_v45  ;;  %v1105_v44 = vld [vmem:[#allocation2 + $0x1b0] sm:$0xff]  ;;  %v1112_v45 = vld [vmem:[#allocation2 + $0x1e8] sm:$0xff] }
 0x311   :  { %1416 = vmatpush1.bf16.msra.mxu1 %v1251_v46  ;;  %1498 = vmatpush1.bf16.msra.mxu0 %v1253_v47  ;;  %v1114_v46 = vld [vmem:[#allocation2 + $0x1f8] sm:$0xff]  ;;  %v1111_v47 = vld [vmem:[#allocation2 + $0x1e0] sm:$0xff] }
 0x312   :  { %1417 = vmatprep.subr.bf16.mxu1 %v1260_v48  ;;  %1499 = vmatprep.subr.bf16.mxu0 %v1262_v49  ;;  %v1113_v48 = vld [vmem:[#allocation2 + $0x1f0] sm:$0xff]  ;;  %v1120_v49 = vld [vmem:[#allocation2 + $0x228] sm:$0xff] }
 0x315   :  { %1418 = vmatpush1.bf16.msra.mxu1 %v1259_v50  ;;  %1500 = vmatpush1.bf16.msra.mxu0 %v1261_v54  ;;  %v1122_v50 = vld [vmem:[#allocation2 + $0x238] sm:$0xff]  ;;  %v1119_v54 = vld [vmem:[#allocation2 + $0x220] sm:$0xff] }
 0x316   :  { %1419 = vmatprep.subr.bf16.mxu1 %v1268_v56  ;;  %1501 = vmatprep.subr.bf16.mxu0 %v1270_v57  ;;  %v1121_v56 = vld [vmem:[#allocation2 + $0x230] sm:$0xff]  ;;  %v1128_v57 = vld [vmem:[#allocation2 + $0x268] sm:$0xff] }
 0x319   :  { %1420 = vmatpush1.bf16.msra.mxu1 %v1267_v58  ;;  %1502 = vmatpush1.bf16.msra.mxu0 %v1269_v59  ;;  %v1130_v58 = vld [vmem:[#allocation2 + $0x278] sm:$0xff]  ;;  %v1127_v59 = vld [vmem:[#allocation2 + $0x260] sm:$0xff] }
 0x31a   :  { %1421 = vmatprep.subr.bf16.mxu1 %v1276_v60  ;;  %1503 = vmatprep.subr.bf16.mxu0 %v1278_v61  ;;  %v1129_v60 = vld [vmem:[#allocation2 + $0x270] sm:$0xff]  ;;  %v1136_v61 = vld [vmem:[#allocation2 + $0x2a8] sm:$0xff] }
 0x31d   :  { %1422 = vmatpush1.bf16.msra.mxu1 %v1275_v62  ;;  %1504 = vmatpush1.bf16.msra.mxu0 %v1277_v63  ;;  %v1138_v62 = vld [vmem:[#allocation2 + $0x2b8] sm:$0xff]  ;;  %v1135_v63 = vld [vmem:[#allocation2 + $0x2a0] sm:$0xff] }
 0x31e   :  { %1423 = vmatprep.subr.bf16.mxu1 %v1284_v0  ;;  %1505 = vmatprep.subr.bf16.mxu0 %v1286_v1  ;;  %v1137_v0 = vld [vmem:[#allocation2 + $0x2b0] sm:$0xff]  ;;  %v1144_v1 = vld [vmem:[#allocation2 + $0x2e8] sm:$0xff] }
 0x321   :  { %1424 = vmatpush1.bf16.msra.mxu1 %v1283_v2  ;;  %1506 = vmatpush1.bf16.msra.mxu0 %v1285_v3  ;;  %v1146_v2 = vld [vmem:[#allocation2 + $0x2f8] sm:$0xff]  ;;  %v1143_v3 = vld [vmem:[#allocation2 + $0x2e0] sm:$0xff] }
 0x322   :  { %1425 = vmatprep.subr.bf16.mxu1 %v1292_v5  ;;  %1507 = vmatprep.subr.bf16.mxu0 %v1294_v6  ;;  %v1145_v5 = vld [vmem:[#allocation2 + $0x2f0] sm:$0xff]  ;;  %v1152_v6 = vld [vmem:[#allocation2 + $0x328] sm:$0xff] }
 0x325   :  { %1426 = vmatpush1.bf16.msra.mxu1 %v1291_v7  ;;  %1508 = vmatpush1.bf16.msra.mxu0 %v1293_v8  ;;  %v1154_v7 = vld [vmem:[#allocation2 + $0x338] sm:$0xff]  ;;  %v1151_v8 = vld [vmem:[#allocation2 + $0x320] sm:$0xff] }
 0x326   :  { %1427 = vmatprep.subr.bf16.mxu1 %v1300_v51  ;;  %1509 = vmatprep.subr.bf16.mxu0 %v1302_v10  ;;  %v1153_v51 = vld [vmem:[#allocation2 + $0x330] sm:$0xff]  ;;  %v1160_v10 = vld [vmem:[#allocation2 + $0x368] sm:$0xff] }
 0x329   :  { %1428 = vmatpush1.bf16.msra.mxu1 %v1299_v11  ;;  %1510 = vmatpush1.bf16.msra.mxu0 %v1301_v12  ;;  %v1162_v11 = vld [vmem:[#allocation2 + $0x378] sm:$0xff]  ;;  %v1159_v12 = vld [vmem:[#allocation2 + $0x360] sm:$0xff] }
 0x32a   :  { %1520 = vmatprep.subr.bf16.mxu1 %v1056_v52  ;;  %1602 = vmatprep.subr.bf16.mxu0 %v1058_v13  ;;  %v1161_v52 = vld [vmem:[#allocation2 + $0x370] sm:$0xff]  ;;  %v1168_v13 = vld [vmem:[#allocation2 + $0x3a8] sm:$0xff] }
 0x32c   :  { %1430 = vmatmul.mubr.bf16.vlgmr.msra.gmra.mrb[4].mxu1 %v3045_v14  ;;  %1512 = vmatmul.mubr.bf16.vlgmr.msra.gmra.mrb[8].mxu0 %v3045_v14 }
 0x32d   :  { %1521 = vmatpush1.bf16.msra.mxu1 %v1055_v15  ;;  %1603 = vmatpush1.bf16.msra.mxu0 %v1057_v17  ;;  %v1170_v15 = vld [vmem:[#allocation2 + $0x3b8] sm:$0xff]  ;;  %v1167_v17 = vld [vmem:[#allocation2 + $0x3a0] sm:$0xff] }
 0x32e   :  { %1522 = vmatprep.subr.bf16.mxu1 %v1064_v18  ;;  %1604 = vmatprep.subr.bf16.mxu0 %v1066_v26  ;;  %v1169_v18 = vld [vmem:[#allocation2 + $0x3b0] sm:$0xff]  ;;  %v1176_v26 = vld [vmem:[#allocation2 + $0x3e8] sm:$0xff] }
 0x32f   :  { %1552 = vmatprep.mubr.bf16.mxu1 %v3027_v53  ;;  %1634 = vmatprep.mubr.bf16.mxu0 %v3027_v53  ;;  %v1087_v53 = vld [vmem:[#allocation2 + $0x120] sm:$0xff] }
 0x331   :  { %1523 = vmatpush1.bf16.msra.mxu1 %v1063_v27  ;;  %1605 = vmatpush1.bf16.msra.mxu0 %v1065_v28  ;;  %v1178_v27 = vld [vmem:[#allocation2 + $0x3f8] sm:$0xff]  ;;  %v1175_v28 = vld [vmem:[#allocation2 + $0x3e0] sm:$0xff] }
 0x332   :  { %1524 = vmatprep.subr.bf16.mxu1 %v1072_v55  ;;  %1606 = vmatprep.subr.bf16.mxu0 %v1074_v29  ;;  %v1177_v55 = vld [vmem:[#allocation2 + $0x3f0] sm:$0xff]  ;;  %v1184_v29 = vld [vmem:[#allocation2 + $0x428] sm:$0xff] }
 0x335   :  { %1525 = vmatpush1.bf16.msra.mxu1 %v1071_v30  ;;  %1607 = vmatpush1.bf16.msra.mxu0 %v1073_v32  ;;  %v1186_v30 = vld [vmem:[#allocation2 + $0x438] sm:$0xff]  ;;  %v1183_v32 = vld [vmem:[#allocation2 + $0x420] sm:$0xff] }
 0x336   :  { %1526 = vmatprep.subr.bf16.mxu1 %v1080_v34  ;;  %1608 = vmatprep.subr.bf16.mxu0 %v1082_v35  ;;  %v1185_v34 = vld [vmem:[#allocation2 + $0x430] sm:$0xff]  ;;  %v1192_v35 = vld [vmem:[#allocation2 + $0x468] sm:$0xff] }
 0x339   :  { %1527 = vmatpush1.bf16.msra.mxu1 %v1079_v36  ;;  %1609 = vmatpush1.bf16.msra.mxu0 %v1081_v33  ;;  %v1194_v36 = vld [vmem:[#allocation2 + $0x478] sm:$0xff]  ;;  %v1191_v33 = vld [vmem:[#allocation2 + $0x460] sm:$0xff] }
 0x33a   :  { %1528 = vmatprep.subr.bf16.mxu1 %v1088_v38  ;;  %1610 = vmatprep.subr.bf16.mxu0 %v1090_v39  ;;  %v1193_v38 = vld [vmem:[#allocation2 + $0x470] sm:$0xff]  ;;  %v1200_v39 = vld [vmem:[#allocation2 + $0x4a8] sm:$0xff] }
 0x33d   :  { %1529 = vmatpush1.bf16.msra.mxu1 %v1087_v53  ;;  %1611 = vmatpush1.bf16.msra.mxu0 %v1089_v40  ;;  %v1202_v53 = vld [vmem:[#allocation2 + $0x4b8] sm:$0xff]  ;;  %v1199_v40 = vld [vmem:[#allocation2 + $0x4a0] sm:$0xff] }
 0x33e   :  { %1530 = vmatprep.subr.bf16.mxu1 %v1096_v41  ;;  %1612 = vmatprep.subr.bf16.mxu0 %v1098_v42  ;;  %v1201_v41 = vld [vmem:[#allocation2 + $0x4b0] sm:$0xff]  ;;  %v1208_v42 = vld [vmem:[#allocation2 + $0x4e8] sm:$0xff] }
 0x341   :  { %1531 = vmatpush1.bf16.msra.mxu1 %v1095_v43  ;;  %1613 = vmatpush1.bf16.msra.mxu0 %v1097_v19  ;;  %v1207_v43 = vld [vmem:[#allocation2 + $0x4e0] sm:$0xff]  ;;  %v1209_v19 = vld [vmem:[#allocation2 + $0x4f0] sm:$0xff] }
 0x342   :  { %1532 = vmatprep.subr.bf16.mxu1 %v1104_v22  ;;  %1614 = vmatprep.subr.bf16.mxu0 %v1106_v24  ;;  %v1216_v22 = vld [vmem:[#allocation2 + $0x528] sm:$0xff]  ;;  %v1218_v24 = vld [vmem:[#allocation2 + $0x538] sm:$0xff] }
 0x345   :  { %1533 = vmatpush1.bf16.msra.mxu1 %v1103_v25  ;;  %1615 = vmatpush1.bf16.msra.mxu0 %v1105_v44  ;;  %v1217_v25 = vld [vmem:[#allocation2 + $0x530] sm:$0xff]  ;;  %v1224_v44 = vld [vmem:[#allocation2 + $0x568] sm:$0xff] }
 0x346   :  { %1534 = vmatprep.subr.bf16.mxu1 %v1112_v45  ;;  %1616 = vmatprep.subr.bf16.mxu0 %v1114_v46  ;;  %v1226_v45 = vld [vmem:[#allocation2 + $0x578] sm:$0xff]  ;;  %v1223_v46 = vld [vmem:[#allocation2 + $0x560] sm:$0xff] }
 0x349   :  { %1535 = vmatpush1.bf16.msra.mxu1 %v1111_v47  ;;  %1617 = vmatpush1.bf16.msra.mxu0 %v1113_v48  ;;  %v1225_v47 = vld [vmem:[#allocation2 + $0x570] sm:$0xff]  ;;  %v1232_v48 = vld [vmem:[#allocation2 + $0x5a8] sm:$0xff] }
 0x34a   :  { %1536 = vmatprep.subr.bf16.mxu1 %v1120_v49  ;;  %1618 = vmatprep.subr.bf16.mxu0 %v1122_v50  ;;  %v1234_v49 = vld [vmem:[#allocation2 + $0x5b8] sm:$0xff]  ;;  %v1231_v50 = vld [vmem:[#allocation2 + $0x5a0] sm:$0xff] }
 0x34d   :  { %1537 = vmatpush1.bf16.msra.mxu1 %v1119_v54  ;;  %1619 = vmatpush1.bf16.msra.mxu0 %v1121_v56  ;;  %v1233_v54 = vld [vmem:[#allocation2 + $0x5b0] sm:$0xff]  ;;  %v1240_v56 = vld [vmem:[#allocation2 + $0x5e8] sm:$0xff] }
 0x34e   :  { %1538 = vmatprep.subr.bf16.mxu1 %v1128_v57  ;;  %1620 = vmatprep.subr.bf16.mxu0 %v1130_v58  ;;  %v1242_v57 = vld [vmem:[#allocation2 + $0x5f8] sm:$0xff]  ;;  %v1239_v58 = vld [vmem:[#allocation2 + $0x5e0] sm:$0xff] }
 0x351   :  { %1539 = vmatpush1.bf16.msra.mxu1 %v1127_v59  ;;  %1621 = vmatpush1.bf16.msra.mxu0 %v1129_v60  ;;  %v1241_v59 = vld [vmem:[#allocation2 + $0x5f0] sm:$0xff]  ;;  %v1248_v60 = vld [vmem:[#allocation2 + $0x628] sm:$0xff] }
 0x352   :  { %1540 = vmatprep.subr.bf16.mxu1 %v1136_v61  ;;  %1622 = vmatprep.subr.bf16.mxu0 %v1138_v62  ;;  %v1250_v61 = vld [vmem:[#allocation2 + $0x638] sm:$0xff]  ;;  %v1247_v62 = vld [vmem:[#allocation2 + $0x620] sm:$0xff] }
 0x355   :  { %1541 = vmatpush1.bf16.msra.mxu1 %v1135_v63  ;;  %1623 = vmatpush1.bf16.msra.mxu0 %v1137_v0  ;;  %v1249_v63 = vld [vmem:[#allocation2 + $0x630] sm:$0xff]  ;;  %v1256_v0 = vld [vmem:[#allocation2 + $0x668] sm:$0xff] }
 0x356   :  { %1542 = vmatprep.subr.bf16.mxu1 %v1144_v1  ;;  %1624 = vmatprep.subr.bf16.mxu0 %v1146_v2  ;;  %v1258_v1 = vld [vmem:[#allocation2 + $0x678] sm:$0xff]  ;;  %v1255_v2 = vld [vmem:[#allocation2 + $0x660] sm:$0xff] }
 0x359   :  { %1543 = vmatpush1.bf16.msra.mxu1 %v1143_v3  ;;  %1625 = vmatpush1.bf16.msra.mxu0 %v1145_v5  ;;  %v1257_v3 = vld [vmem:[#allocation2 + $0x670] sm:$0xff]  ;;  %v1264_v5 = vld [vmem:[#allocation2 + $0x6a8] sm:$0xff] }
 0x35a   :  { %1544 = vmatprep.subr.bf16.mxu1 %v1152_v6  ;;  %1626 = vmatprep.subr.bf16.mxu0 %v1154_v7  ;;  %v1266_v6 = vld [vmem:[#allocation2 + $0x6b8] sm:$0xff]  ;;  %v1263_v7 = vld [vmem:[#allocation2 + $0x6a0] sm:$0xff] }
 0x35d   :  { %1545 = vmatpush1.bf16.msra.mxu1 %v1151_v8  ;;  %1627 = vmatpush1.bf16.msra.mxu0 %v1153_v51  ;;  %v1265_v8 = vld [vmem:[#allocation2 + $0x6b0] sm:$0xff]  ;;  %v1272_v51 = vld [vmem:[#allocation2 + $0x6e8] sm:$0xff] }
 0x35e   :  { %1546 = vmatprep.subr.bf16.mxu1 %v1160_v10  ;;  %1628 = vmatprep.subr.bf16.mxu0 %v1162_v11  ;;  %v1274_v10 = vld [vmem:[#allocation2 + $0x6f8] sm:$0xff]  ;;  %v1271_v11 = vld [vmem:[#allocation2 + $0x6e0] sm:$0xff] }
 0x361   :  { %1547 = vmatpush1.bf16.msra.mxu1 %v1159_v12  ;;  %1629 = vmatpush1.bf16.msra.mxu0 %v1161_v52  ;;  %v1273_v12 = vld [vmem:[#allocation2 + $0x6f0] sm:$0xff]  ;;  %v1280_v52 = vld [vmem:[#allocation2 + $0x728] sm:$0xff] }
 0x362   :  { %1548 = vmatprep.subr.bf16.mxu1 %v1168_v13  ;;  %1630 = vmatprep.subr.bf16.mxu0 %v1170_v15  ;;  %v1282_v13 = vld [vmem:[#allocation2 + $0x738] sm:$0xff]  ;;  %v1279_v15 = vld [vmem:[#allocation2 + $0x720] sm:$0xff] }
 0x365   :  { %1549 = vmatpush1.bf16.msra.mxu1 %v1167_v17  ;;  %1631 = vmatpush1.bf16.msra.mxu0 %v1169_v18  ;;  %v1281_v17 = vld [vmem:[#allocation2 + $0x730] sm:$0xff]  ;;  %v1288_v18 = vld [vmem:[#allocation2 + $0x768] sm:$0xff] }
 0x366   :  { %1550 = vmatprep.subr.bf16.mxu1 %v1176_v26  ;;  %1632 = vmatprep.subr.bf16.mxu0 %v1178_v27  ;;  %v1290_v26 = vld [vmem:[#allocation2 + $0x778] sm:$0xff]  ;;  %v1287_v27 = vld [vmem:[#allocation2 + $0x760] sm:$0xff] }
 0x369   :  { %1551 = vmatpush1.bf16.msra.mxu1 %v1175_v28  ;;  %1633 = vmatpush1.bf16.msra.mxu0 %v1177_v55  ;;  %v1289_v28 = vld [vmem:[#allocation2 + $0x770] sm:$0xff]  ;;  %v1296_v55 = vld [vmem:[#allocation2 + $0x7a8] sm:$0xff] }
 0x36a   :  { %1561 = vmatprep.subr.bf16.mxu1 %v1184_v29  ;;  %1643 = vmatprep.subr.bf16.mxu0 %v1186_v30  ;;  %v1298_v29 = vld [vmem:[#allocation2 + $0x7b8] sm:$0xff]  ;;  %v1295_v30 = vld [vmem:[#allocation2 + $0x7a0] sm:$0xff] }
 0x36c   :  { %1553 = vmatmul.mubr.bf16.vlgmr.msra.gmra.mrb[8].mxu1 %v3033_v4  ;;  %1635 = vmatmul.mubr.bf16.vlgmr.msra.gmra.mrb[12].mxu0 %v3033_v4  ;;  %v1210_v4 = vld [vmem:[#allocation2 + $0x4f8] sm:$0xff] }
 0x36d   :  { %1562 = vmatpush1.bf16.msra.mxu1 %v1183_v32  ;;  %1644 = vmatpush1.bf16.msra.mxu0 %v1185_v34  ;;  %v1297_v32 = vld [vmem:[#allocation2 + $0x7b0] sm:$0xff]  ;;  %v1304_v34 = vld [vmem:[#allocation2 + $0x7e8] sm:$0xff] }
 0x36e   :  { %1563 = vmatprep.subr.bf16.mxu1 %v1192_v35  ;;  %1645 = vmatprep.subr.bf16.mxu0 %v1194_v36  ;;  %v1306_v35 = vld [vmem:[#allocation2 + $0x7f8] sm:$0xff]  ;;  %v1303_v36 = vld [vmem:[#allocation2 + $0x7e0] sm:$0xff] }
 0x36f   :  { %1593 = vmatprep.mubr.bf16.mxu1 %v3037_v9  ;;  %1675 = vmatprep.mubr.bf16.mxu0 %v3037_v9  ;;  %v1215_v9 = vld [vmem:[#allocation2 + $0x520] sm:$0xff] }
 0x371   :  { %1564 = vmatpush1.bf16.msra.mxu1 %v1191_v33  ;;  %1646 = vmatpush1.bf16.msra.mxu0 %v1193_v38  ;;  %v1305_v33 = vld [vmem:[#allocation2 + $0x7f0] sm:$0xff] }
 0x372   :  { %1565 = vmatprep.subr.bf16.mxu1 %v1200_v39  ;;  %1647 = vmatprep.subr.bf16.mxu0 %v1202_v53  ;;  %v1308_v38 = vld [vmem:[#allocation11 + $0x6] ss:$8 sm:$0xf] }
 0x373   :  { %v1309_v39 = vld [vmem:[#allocation11 + $0x6] ss:$8 sm:$0xf0] }
 0x374   :  { %v3057_v53 = vor.u32 %v1309_v39, %v1308_v38 }
 0x375   :  { %1566 = vmatpush1.bf16.msra.mxu1 %v1199_v40  ;;  %1648 = vmatpush1.bf16.msra.mxu0 %v1201_v41 }
 0x376   :  { %1567 = vmatprep.subr.bf16.mxu1 %v1208_v42  ;;  %1649 = vmatprep.subr.bf16.mxu0 %v1210_v4  ;;  %v1319_v40 = vrot.slane %v3057_v53, %v2942_v21  ;;  %v1327_v41 = vrot.slane %v3057_v53, %v2973_v31  ;;  %v1323_v42 = vrot.slane %v3057_v53, %v2945_v23 }
 0x377   :  { %v1331_v4 = vrot.slane %v3057_v53, %v2976_v37 }
 0x379   :  { %1568 = vmatpush1.bf16.msra.mxu1 %v1207_v43  ;;  %1650 = vmatpush1.bf16.msra.mxu0 %v1209_v19 }
 0x37a   :  { %1569 = vmatprep.subr.bf16.mxu1 %v1216_v22  ;;  %1651 = vmatprep.subr.bf16.mxu0 %v1218_v24 }
 0x37d   :  { %1570 = vmatpush1.bf16.msra.mxu1 %v1215_v9  ;;  %1652 = vmatpush1.bf16.msra.mxu0 %v1217_v25 }
 0x37e   :  { %1571 = vmatprep.subr.bf16.mxu1 %v1224_v44  ;;  %1653 = vmatprep.subr.bf16.mxu0 %v1226_v45 }
 0x381   :  { %1572 = vmatpush1.bf16.msra.mxu1 %v1223_v46  ;;  %1654 = vmatpush1.bf16.msra.mxu0 %v1225_v47 }
 0x382   :  { %1573 = vmatprep.subr.bf16.mxu1 %v1232_v48  ;;  %1655 = vmatprep.subr.bf16.mxu0 %v1234_v49 }
 0x385   :  { %1574 = vmatpush1.bf16.msra.mxu1 %v1231_v50  ;;  %1656 = vmatpush1.bf16.msra.mxu0 %v1233_v54 }
 0x386   :  { %1575 = vmatprep.subr.bf16.mxu1 %v1240_v56  ;;  %1657 = vmatprep.subr.bf16.mxu0 %v1242_v57 }
 0x389   :  { %1576 = vmatpush1.bf16.msra.mxu1 %v1239_v58  ;;  %1658 = vmatpush1.bf16.msra.mxu0 %v1241_v59 }
 0x38a   :  { %1577 = vmatprep.subr.bf16.mxu1 %v1248_v60  ;;  %1659 = vmatprep.subr.bf16.mxu0 %v1250_v61 }
 0x38d   :  { %1578 = vmatpush1.bf16.msra.mxu1 %v1247_v62  ;;  %1660 = vmatpush1.bf16.msra.mxu0 %v1249_v63 }
 0x38e   :  { %1579 = vmatprep.subr.bf16.mxu1 %v1256_v0  ;;  %1661 = vmatprep.subr.bf16.mxu0 %v1258_v1 }
 0x391   :  { %1580 = vmatpush1.bf16.msra.mxu1 %v1255_v2  ;;  %1662 = vmatpush1.bf16.msra.mxu0 %v1257_v3 }
 0x392   :  { %1581 = vmatprep.subr.bf16.mxu1 %v1264_v5  ;;  %1663 = vmatprep.subr.bf16.mxu0 %v1266_v6 }
 0x395   :  { %1582 = vmatpush1.bf16.msra.mxu1 %v1263_v7  ;;  %1664 = vmatpush1.bf16.msra.mxu0 %v1265_v8 }
 0x396   :  { %1583 = vmatprep.subr.bf16.mxu1 %v1272_v51  ;;  %1665 = vmatprep.subr.bf16.mxu0 %v1274_v10 }
 0x399   :  { %1584 = vmatpush1.bf16.msra.mxu1 %v1271_v11  ;;  %1666 = vmatpush1.bf16.msra.mxu0 %v1273_v12 }
 0x39a   :  { %1585 = vmatprep.subr.bf16.mxu1 %v1280_v52  ;;  %1667 = vmatprep.subr.bf16.mxu0 %v1282_v13 }
 0x39d   :  { %1586 = vmatpush1.bf16.msra.mxu1 %v1279_v15  ;;  %1668 = vmatpush1.bf16.msra.mxu0 %v1281_v17 }
 0x39e   :  { %1587 = vmatprep.subr.bf16.mxu1 %v1288_v18  ;;  %1669 = vmatprep.subr.bf16.mxu0 %v1290_v26 }
 0x3a1   :  { %1588 = vmatpush1.bf16.msra.mxu1 %v1287_v27  ;;  %1670 = vmatpush1.bf16.msra.mxu0 %v1289_v28 }
 0x3a2   :  { %1589 = vmatprep.subr.bf16.mxu1 %v1296_v55  ;;  %1671 = vmatprep.subr.bf16.mxu0 %v1298_v29 }
 0x3a5   :  { %1590 = vmatpush1.bf16.msra.mxu1 %v1295_v30  ;;  %1672 = vmatpush1.bf16.msra.mxu0 %v1297_v32 }
 0x3a6   :  { %1591 = vmatprep.subr.bf16.mxu1 %v1304_v34  ;;  %1673 = vmatprep.subr.bf16.mxu0 %v1306_v35 }
 0x3a9   :  { %1592 = vmatpush1.bf16.msra.mxu1 %v1303_v36  ;;  %1674 = vmatpush1.bf16.msra.mxu0 %v1305_v33 }
 0x3ac   :  { %1594 = vmatmul.mubr.bf16.vlgmr.msra.gmra.mrb[8].mxu1 %v3045_v14  ;;  %1676 = vmatmul.mubr.bf16.vlgmr.msra.gmra.mrb[12].mxu0 %v3045_v14 }
 0x3ff   :  { %v1431_v43 = vpop.f32.mrb[4].mxu1  ;;  %v1513_v19 = vpop.f32.mrb[8].mxu0 }
 0x400   :  { %v2490_v22 = vadd.f32 %v1431_v43, %v1319_v40  ;;  %v2492_v14 = vadd.f32 %v1513_v19, %v1327_v41  ;;  %v1433_v24 = vpop.f32.mrb[5].mxu1  ;;  %v1515_v9 = vpop.f32.mrb[9].mxu0 }
 0x401   :  { %v2491_v25 = vadd.f32 %v1433_v24, %v1323_v42  ;;  %v2493_v44 = vadd.f32 %v1515_v9, %v1331_v4  ;;  %v1435_v45 = vpop.f32.mrb[6].mxu1  ;;  %v1517_v46 = vpop.f32.mrb[10].mxu0 }
 0x402   :  { %v3067_v47 = vmax.f32 %v2490_v22, 0.0  ;;  %v3069_v48 = vmax.f32 %v2492_v14, 0.0  ;;  %v1436_v49 = vpop.f32.mrb[7].mxu1  ;;  %v1518_v50 = vpop.f32.mrb[11].mxu0 }
 0x403   :  { %v3071_v54 = vmax.f32 %v2491_v25, 0.0  ;;  %v3073_v56 = vmax.f32 %v2493_v44, 0.0 }
 0x404   :  { %v1700_v57 = vrot.slane %v3067_v47, 4  ;;  %v1712_v58 = vrot.slane %v3069_v48, 4 }
 0x405   :  { %v1706_v59 = vrot.slane %v3071_v54, 4  ;;  %v1718_v60 = vrot.slane %v3073_v56, 4 }
 0x406   :  { %v1701_v61 = vadd.f32 %v1700_v57, %v3067_v47  ;;  %v1713_v62 = vadd.f32 %v1712_v58, %v3069_v48 }
 0x407   :  { %v1707_v63 = vadd.f32 %v1706_v59, %v3071_v54  ;;  %v1719_v0 = vadd.f32 %v1718_v60, %v3073_v56 }
 0x408   :  { %v1702_v1 = vrot.slane %v1701_v61, 2  ;;  %v1714_v2 = vrot.slane %v1713_v62, 2 }
 0x409   :  { %v1708_v3 = vrot.slane %v1707_v63, 2  ;;  %v1720_v5 = vrot.slane %v1719_v0, 2 }
 0x40a   :  { %v1703_v6 = vadd.f32 %v1702_v1, %v1701_v61  ;;  %v1715_v7 = vadd.f32 %v1714_v2, %v1713_v62 }
 0x40b   :  { %v1709_v8 = vadd.f32 %v1708_v3, %v1707_v63  ;;  %v1721_v51 = vadd.f32 %v1720_v5, %v1719_v0 }
 0x40c   :  { %v1704_v10 = vrot.slane %v1703_v6, 1  ;;  %v1716_v11 = vrot.slane %v1715_v7, 1 }
 0x40d   :  { %v1710_v12 = vrot.slane %v1709_v8, 1  ;;  %v1722_v52 = vrot.slane %v1721_v51, 1 }
 0x40e   :  { %v1705_v13 = vadd.f32 %v1704_v10, %v1703_v6  ;;  %v1717_v15 = vadd.f32 %v1716_v11, %v1715_v7  ;;  %v1694_v10 = vld [vmem:[#allocation11 + $0x7] ss:$8 sm:$0xf0] }
 0x40f   :  { %v1711_v17 = vadd.f32 %v1710_v12, %v1709_v8  ;;  %v1723_v18 = vadd.f32 %v1722_v52, %v1721_v51  ;;  %v1693_v51 = vld [vmem:[#allocation11 + $0x7] ss:$8 sm:$0xf] }
 0x410   :  { %v1748_v26 = vmul.f32 0.125, %v1705_v13  ;;  %v1750_v27 = vmul.f32 0.125, %v1717_v15  ;;  %v3093_v11 = vor.u32 %v1694_v10, %v1693_v51 }
 0x411   :  { %v3083_v28 = vmul.f32 0.125, %v1711_v17  ;;  %v3085_v55 = vmul.f32 0.125, %v1723_v18 }
 0x412   :  { %v1756_v29 = vsub.f32 %v3067_v47, %v1748_v26  ;;  %v1758_v30 = vsub.f32 %v3069_v48, %v1750_v27  ;;  %v1848_v12 = vrot.slane %v3093_v11, %v2942_v21  ;;  %v1856_v52 = vrot.slane %v3093_v11, %v2973_v31 }
 0x413   :  { %v1757_v32 = vsub.f32 %v3071_v54, %v3083_v28  ;;  %v1759_v34 = vsub.f32 %v3073_v56, %v3085_v55  ;;  %v1852_v13 = vrot.slane %v3093_v11, %v2945_v23  ;;  %v1860_v17 = vrot.slane %v3093_v11, %v2976_v37 }
 0x414   :  { %v1764_v35 = vmul.f32 %v1756_v29, %v1756_v29  ;;  %v1766_v36 = vmul.f32 %v1758_v30, %v1758_v30 }
 0x415   :  { %v1765_v33 = vmul.f32 %v1757_v32, %v1757_v32  ;;  %v1767_v38 = vmul.f32 %v1759_v34, %v1759_v34 }
 0x416   :  { %v1772_v39 = vrot.slane %v1764_v35, 4  ;;  %v1784_v40 = vrot.slane %v1766_v36, 4 }
 0x417   :  { %v1778_v41 = vrot.slane %v1765_v33, 4  ;;  %v1790_v42 = vrot.slane %v1767_v38, 4 }
 0x418   :  { %v1773_v4 = vadd.f32 %v1772_v39, %v1764_v35  ;;  %v1785_v43 = vadd.f32 %v1784_v40, %v1766_v36 }
 0x419   :  { %v1779_v19 = vadd.f32 %v1778_v41, %v1765_v33  ;;  %v1791_v22 = vadd.f32 %v1790_v42, %v1767_v38 }
 0x41a   :  { %v1774_v14 = vrot.slane %v1773_v4, 2  ;;  %v1786_v24 = vrot.slane %v1785_v43, 2 }
 0x41b   :  { %v1780_v9 = vrot.slane %v1779_v19, 2  ;;  %v1792_v25 = vrot.slane %v1791_v22, 2 }
 0x41c   :  { %v1775_v44 = vadd.f32 %v1774_v14, %v1773_v4  ;;  %v1787_v45 = vadd.f32 %v1786_v24, %v1785_v43 }
 0x41d   :  { %v1781_v46 = vadd.f32 %v1780_v9, %v1779_v19  ;;  %v1793_v49 = vadd.f32 %v1792_v25, %v1791_v22  ;;  %v3129_v19 = vsub.s32 6, %v2939_v20 }
 0x41e   :  { %v1776_v50 = vrot.slane %v1775_v44, 1  ;;  %v1788_v57 = vrot.slane %v1787_v45, 1 }
 0x41f   :  { %v1782_v58 = vrot.slane %v1781_v46, 1  ;;  %v1794_v59 = vrot.slane %v1793_v49, 1  ;;  %v1343_v14 = vrot.slane %v3057_v53, %v3129_v19 }
 0x420   :  { %v1777_v60 = vadd.f32 %v1776_v50, %v1775_v44  ;;  %v1789_v61 = vadd.f32 %v1788_v57, %v1787_v45 }
 0x421   :  { %v1783_v62 = vadd.f32 %v1782_v58, %v1781_v46  ;;  %v1795_v63 = vadd.f32 %v1794_v59, %v1793_v49 }
 0x422   :  { %v1820_v0 = vmul.f32 0.125, %v1777_v60  ;;  %v1822_v1 = vmul.f32 0.125, %v1789_v61 }
 0x423   :  { %v1821_v2 = vmul.f32 0.125, %v1783_v62  ;;  %v1823_v3 = vmul.f32 0.125, %v1795_v63 }
 0x424   :  { %v1828_v5 = vadd.f32 1e-05, %v1820_v0  ;;  %v1830_v6 = vadd.f32 1e-05, %v1822_v1 }
 0x425   :  { %v1829_v7 = vadd.f32 1e-05, %v1821_v2  ;;  %v1831_v8 = vadd.f32 1e-05, %v1823_v3 }
 0x426   :  { %2666 = vrsqrt.f32 %v1828_v5 }
 0x427   :  { %2668 = vrsqrt.f32 %v1830_v6 }
 0x428   :  { %2670 = vrsqrt.f32 %v1829_v7 }
 0x429   :  { %2672 = vrsqrt.f32 %v1831_v8 }
 0x430   :  { %v2667_v15 = vpop.eup %2666 }
 0x431   :  { %v2669_v18 = vpop.eup %2668  ;;  %v3103_v29 = vmul.f32 %v2667_v15, %v1848_v12 }
 0x432   :  { %v2671_v30 = vpop.eup %2670  ;;  %v3105_v32 = vmul.f32 %v2669_v18, %v1856_v52 }
 0x433   :  { %v2673_v34 = vpop.eup %2672  ;;  %v1893_v35 = vmul.f32 %v3103_v29, %v1748_v26  ;;  %v3108_v36 = vmul.f32 %v2671_v30, %v1852_v13 }
 0x434   :  { %v1895_v33 = vmul.f32 %v3105_v32, %v1750_v27  ;;  %v3111_v38 = vmul.f32 %v2673_v34, %v1860_v17  ;;  %v3126_v27 = vsub.s32 4, %v2939_v20 }
 0x435   :  { %v1894_v39 = vmul.f32 %v3108_v36, %v3083_v28  ;;  %v3132_v28 = vsub.s32 5, %v2939_v20 }
 0x436   :  { %v1896_v40 = vmul.f32 %v3111_v38, %v3085_v55  ;;  %v3135_v55 = vsub.s32 7, %v2939_v20  ;;  %v1335_v22 = vrot.slane %v3057_v53, %v3126_v27 }
 0x437   :  { %v1909_v41 = vcombine.low %v1893_v35, %v1894_v39  ;;  %v1339_v24 = vrot.slane %v3057_v53, %v3132_v28 }
 0x438   :  { %v1910_v42 = vcombine.low %v1895_v33, %v1896_v40  ;;  %v1347_v9 = vrot.slane %v3057_v53, %v3135_v55 }
 0x439   :  { %v3118_v4 = vrot.slane %v1909_v41, %v2952_v16 }
 0x43a   :  { %v3121_v43 = vrot.slane %v1910_v42, %v2952_v16 }
 0x43c   :  { %v1941_v26 = vcombine.low %v3118_v4, %v3121_v43 }
 0x47f   :  { %v1595_v25 = vpop.f32.mrb[8].mxu1  ;;  %v1677_v44 = vpop.f32.mrb[12].mxu0 }
 0x480   :  { %v2494_v45 = vadd.f32 %v1595_v25, %v1335_v22  ;;  %v2496_v46 = vadd.f32 %v1677_v44, %v1343_v14  ;;  %v1597_v49 = vpop.f32.mrb[9].mxu1  ;;  %v1679_v50 = vpop.f32.mrb[13].mxu0 }
 0x481   :  { %v2495_v20 = vadd.f32 %v1597_v49, %v1339_v24  ;;  %v2497_v57 = vadd.f32 %v1679_v50, %v1347_v9  ;;  %v1599_v58 = vpop.f32.mrb[10].mxu1  ;;  %v1681_v59 = vpop.f32.mrb[14].mxu0 }
 0x482   :  { %v3145_v60 = vmax.f32 %v2494_v45, 0.0  ;;  %v3147_v61 = vmax.f32 %v2496_v46, 0.0  ;;  %v1600_v62 = vpop.f32.mrb[11].mxu1  ;;  %v1682_v63 = vpop.f32.mrb[15].mxu0 }
 0x483   :  { %v3149_v0 = vmax.f32 %v2495_v20, 0.0  ;;  %v3151_v1 = vmax.f32 %v2497_v57, 0.0 }
 0x484   :  { %v1724_v53 = vrot.slane %v3145_v60, 4  ;;  %v1736_v2 = vrot.slane %v3147_v61, 4 }
 0x485   :  { %v1730_v3 = vrot.slane %v3149_v0, 4  ;;  %v1742_v5 = vrot.slane %v3151_v1, 4 }
 0x486   :  { %v1725_v6 = vadd.f32 %v1724_v53, %v3145_v60  ;;  %v1737_v7 = vadd.f32 %v1736_v2, %v3147_v61 }
 0x487   :  { %v1731_v8 = vadd.f32 %v1730_v3, %v3149_v0  ;;  %v1743_v51 = vadd.f32 %v1742_v5, %v3151_v1 }
 0x488   :  { %v1726_v10 = vrot.slane %v1725_v6, 2  ;;  %v1738_v12 = vrot.slane %v1737_v7, 2 }
 0x489   :  { %v1732_v52 = vrot.slane %v1731_v8, 2  ;;  %v1744_v13 = vrot.slane %v1743_v51, 2 }
 0x48a   :  { %v1727_v15 = vadd.f32 %v1726_v10, %v1725_v6  ;;  %v1739_v17 = vadd.f32 %v1738_v12, %v1737_v7 }
 0x48b   :  { %v1733_v18 = vadd.f32 %v1732_v52, %v1731_v8  ;;  %v1745_v30 = vadd.f32 %v1744_v13, %v1743_v51 }
 0x48c   :  { %v1728_v34 = vrot.slane %v1727_v15, 1  ;;  %v1740_v35 = vrot.slane %v1739_v17, 1 }
 0x48d   :  { %v1734_v33 = vrot.slane %v1733_v18, 1  ;;  %v1746_v39 = vrot.slane %v1745_v30, 1 }
 0x48e   :  { %v1729_v40 = vadd.f32 %v1728_v34, %v1727_v15  ;;  %v1741_v41 = vadd.f32 %v1740_v35, %v1739_v17 }
 0x48f   :  { %v1735_v42 = vadd.f32 %v1734_v33, %v1733_v18  ;;  %v1747_v22 = vadd.f32 %v1746_v39, %v1745_v30 }
 0x490   :  { %v1752_v14 = vmul.f32 0.125, %v1729_v40  ;;  %v1754_v24 = vmul.f32 0.125, %v1741_v41 }
 0x491   :  { %v1753_v9 = vmul.f32 0.125, %v1735_v42  ;;  %v1755_v25 = vmul.f32 0.125, %v1747_v22 }
 0x492   :  { %v1760_v44 = vsub.f32 %v3145_v60, %v1752_v14  ;;  %v1762_v45 = vsub.f32 %v3147_v61, %v1754_v24 }
 0x493   :  { %v1761_v46 = vsub.f32 %v3149_v0, %v1753_v9  ;;  %v1763_v49 = vsub.f32 %v3151_v1, %v1755_v25 }
 0x494   :  { %v1768_v50 = vmul.f32 %v1760_v44, %v1760_v44  ;;  %v1770_v20 = vmul.f32 %v1762_v45, %v1762_v45 }
 0x495   :  { %v1769_v57 = vmul.f32 %v1761_v46, %v1761_v46  ;;  %v1771_v58 = vmul.f32 %v1763_v49, %v1763_v49 }
 0x496   :  { %v1796_v59 = vrot.slane %v1768_v50, 4  ;;  %v1808_v62 = vrot.slane %v1770_v20, 4 }
 0x497   :  { %v1802_v63 = vrot.slane %v1769_v57, 4  ;;  %v1814_v53 = vrot.slane %v1771_v58, 4 }
 0x498   :  { %v1797_v2 = vadd.f32 %v1796_v59, %v1768_v50  ;;  %v1809_v3 = vadd.f32 %v1808_v62, %v1770_v20  ;;  %v1864_v20 = vrot.slane %v3093_v11, %v3126_v27  ;;  %v1876_v62 = vrot.slane %v3093_v11, %v3135_v55 }
 0x499   :  { %v1803_v5 = vadd.f32 %v1802_v63, %v1769_v57  ;;  %v1815_v6 = vadd.f32 %v1814_v53, %v1771_v58  ;;  %v1872_v57 = vrot.slane %v3093_v11, %v3129_v19  ;;  %v1868_v58 = vrot.slane %v3093_v11, %v3132_v28 }
 0x49a   :  { %v1798_v7 = vrot.slane %v1797_v2, 2  ;;  %v1810_v8 = vrot.slane %v1809_v3, 2 }
 0x49b   :  { %v1804_v51 = vrot.slane %v1803_v5, 2  ;;  %v1816_v10 = vrot.slane %v1815_v6, 2 }
 0x49c   :  { %v1799_v12 = vadd.f32 %v1798_v7, %v1797_v2  ;;  %v1811_v52 = vadd.f32 %v1810_v8, %v1809_v3 }
 0x49d   :  { %v1805_v13 = vadd.f32 %v1804_v51, %v1803_v5  ;;  %v1817_v15 = vadd.f32 %v1816_v10, %v1815_v6 }
 0x49e   :  { %v1800_v17 = vrot.slane %v1799_v12, 1  ;;  %v1812_v18 = vrot.slane %v1811_v52, 1 }
 0x49f   :  { %v1806_v30 = vrot.slane %v1805_v13, 1  ;;  %v1818_v34 = vrot.slane %v1817_v15, 1 }
 0x4a0   :  { %v1801_v35 = vadd.f32 %v1800_v17, %v1799_v12  ;;  %v1813_v33 = vadd.f32 %v1812_v18, %v1811_v52  ;;  %v1697_v18 = vld [vmem:[#allocation11 + $0x40] ss:$8 sm:$0xf] }
 0x4a1   :  { %v1807_v39 = vadd.f32 %v1806_v30, %v1805_v13  ;;  %v1819_v40 = vadd.f32 %v1818_v34, %v1817_v15  ;;  %v1698_v30 = vld [vmem:[#allocation11 + $0x40] ss:$8 sm:$0xf0]  ;;  %v1963_v34 = vrot.slane %v3103_v29, %v2942_v21 }
 0x4a2   :  { %v1824_v41 = vmul.f32 0.125, %v1801_v35  ;;  %v1826_v42 = vmul.f32 0.125, %v1813_v33  ;;  %v1699_v35 = vor.u32 %v1698_v30, %v1697_v18 }
 0x4a3   :  { %v1825_v22 = vmul.f32 0.125, %v1807_v39  ;;  %v1827_v44 = vmul.f32 0.125, %v1819_v40 }
 0x4a4   :  { %v1832_v45 = vadd.f32 1e-05, %v1824_v41  ;;  %v1834_v46 = vadd.f32 1e-05, %v1826_v42  ;;  %v1992_v41 = vmul.f32 %v1963_v34, %v3067_v47 }
 0x4a5   :  { %v1833_v49 = vadd.f32 1e-05, %v1825_v22  ;;  %v1835_v50 = vadd.f32 1e-05, %v1827_v44 }
 0x4a6   :  { %2674 = vrsqrt.f32 %v1832_v45 }
 0x4a7   :  { %2676 = vrsqrt.f32 %v1834_v46 }
 0x4a8   :  { %2678 = vrsqrt.f32 %v1833_v49 }
 0x4a9   :  { %2680 = vrsqrt.f32 %v1835_v50 }
 0x4b0   :  { %v2675_v59 = vpop.eup %2674 }
 0x4b1   :  { %v2677_v63 = vpop.eup %2676  ;;  %v1889_v53 = vmul.f32 %v2675_v59, %v1864_v20 }
 0x4b2   :  { %v2679_v2 = vpop.eup %2678  ;;  %v1891_v3 = vmul.f32 %v2677_v63, %v1872_v57 }
 0x4b3   :  { %v2681_v5 = vpop.eup %2680  ;;  %v1897_v6 = vmul.f32 %v1889_v53, %v1752_v14  ;;  %v1890_v7 = vmul.f32 %v2679_v2, %v1868_v58  ;;  %v1971_v14 = vrot.slane %v3105_v32, %v2942_v21  ;;  %v1979_v39 = vrot.slane %v1889_v53, %v2942_v21 }
 0x4b4   :  { %v1899_v8 = vmul.f32 %v1891_v3, %v1754_v24  ;;  %v1892_v51 = vmul.f32 %v2681_v5, %v1876_v62  ;;  %v1967_v24 = vrot.slane %v3108_v36, %v2942_v21  ;;  %v1987_v29 = vrot.slane %v1891_v3, %v2942_v21 }
 0x4b5   :  { %v1898_v10 = vmul.f32 %v1890_v7, %v1753_v9  ;;  %v1949_v9 = vrot.slane %v1941_v26, %v2952_v16  ;;  %v1983_v32 = vrot.slane %v1890_v7, %v2942_v21  ;;  %v1994_v4 = vmul.f32 %v1971_v14, %v3069_v48 }
 0x4b6   :  { %v1900_v12 = vmul.f32 %v1892_v51, %v1755_v25  ;;  %v1975_v25 = vrot.slane %v3111_v38, %v2942_v21  ;;  %v1991_v40 = vrot.slane %v1892_v51, %v2942_v21  ;;  %v1993_v43 = vmul.f32 %v1967_v24, %v3071_v54 }
 0x4b7   :  { %v1911_v52 = vcombine.low %v1897_v6, %v1898_v10  ;;  %v1998_v42 = vmul.f32 %v1987_v29, %v3147_v61  ;;  %v1997_v22 = vmul.f32 %v1983_v32, %v3149_v0 }
 0x4b8   :  { %v1912_v13 = vcombine.low %v1899_v8, %v1900_v12  ;;  %v1995_v38 = vmul.f32 %v1975_v25, %v3073_v56  ;;  %v1999_v44 = vmul.f32 %v1991_v40, %v3151_v1 }
 0x4b9   :  { %v1933_v15 = vrot.slane %v1911_v52, %v2952_v16 }
 0x4ba   :  { %v1940_v17 = vrot.slane %v1912_v13, %v2952_v16 }
 0x4bc   :  { %v1942_v11 = vcombine.low %v1933_v15, %v1940_v17 }
 0x4be   :  { %v1956_v33 = vrot.slane %v1942_v11, %v2952_v16  ;;  %v1996_v16 = vmul.f32 %v1979_v39, %v3145_v60 }
 0x4c0   :  { %v1957_v36 = vcombine.low %v1949_v9, %v1956_v33 }
 0x4c2   :  { %v1959_v26 = vsub.f32 %v1699_v35, %v1957_v36 }
 0x4c4   :  { %v2004_v45 = vrot.slane %v1959_v26, %v2942_v21  ;;  %v2008_v46 = vrot.slane %v1959_v26, %v2945_v23  ;;  %v2012_v47 = vrot.slane %v1959_v26, %v2973_v31  ;;  %v2016_v48 = vrot.slane %v1959_v26, %v2976_v37 }
 0x4c5   :  { %v2020_v54 = vrot.slane %v1959_v26, %v3126_v27  ;;  %v2024_v56 = vrot.slane %v1959_v26, %v3132_v28  ;;  %v2028_v60 = vrot.slane %v1959_v26, %v3129_v19  ;;  %v2032_v61 = vrot.slane %v1959_v26, %v3135_v55 }
 0x4c6   :  { %v3208_v49 = vadd.f32 %v2004_v45, %v1992_v41  ;;  %v2042_v0 = vadd.f32 %v2008_v46, %v1993_v43  ;;  %v3210_v1 = vadd.f32 %v2012_v47, %v1994_v4  ;;  %v2044_v21 = vadd.f32 %v2016_v48, %v1995_v38 }
 0x4c7   :  { %v3212_v50 = vadd.f32 %v2020_v54, %v1996_v16  ;;  %v3214_v23 = vadd.f32 %v2024_v56, %v1997_v22  ;;  %v3216_v31 = vadd.f32 %v2028_v60, %v1998_v42  ;;  %v3218_v37 = vadd.f32 %v2032_v61, %v1999_v44 }
 0x4c8   :  { %2824 = dma.done.wait [#allocation4 + $0x1], 8192 }
 0x4c9   :  { %2825 = vsyncadd [#allocation4 + $0x1], 4294959104  ;;  %v2119_v27 = vpack.c.bf16 %v2042_v0, %v2042_v0  ;;  %v2121_v19 = vpack.c.bf16 %v2044_v21, %v2044_v21  ;;  %v2061_v28 = vld [vmem:[#allocation3 + $0x40] sm:$0xff]  ;;  %v2062_v58 = vld [vmem:[#allocation3 + $0x48] sm:$0xff]  ;;  %v2118_v32 = vpack.c.bf16 %v3208_v49, %v3208_v49  ;;  %v2120_v40 = vpack.c.bf16 %v3210_v1, %v3210_v1  ;;  %s2847_s4 = smov [#allocation13]  }
 0x4ca   :  { %v2077_v55 = vld [vmem:[#allocation3 + $0xc0] sm:$0xff]  ;;  %2402 = vmatprep.subr.bf16.mxu1 %v2061_v28  ;;  %v2078_v59 = vld [vmem:[#allocation3 + $0xc8] sm:$0xff]  ;;  %v2063_v53 = vld [vmem:[#allocation3 + $0x50] sm:$0xff]  ;;  %v2123_v38 = vpack.c.bf16 %v3214_v23, %v3214_v23  ;;  %v2125_v26 = vpack.c.bf16 %v3218_v37, %v3218_v37  ;;  %s2294_s22 = sshll.u32 %s2847_s4, 4  ;;  %s2295_s22 = int_to_ptr.vmem [resolvable:$true] %s2294_s22 }
 0x4cb   :  { %2158 = vmatprep.mubr.bf16.mxu1 %v2119_v27  ;;  %2198 = vmatprep.mubr.bf16.mxu0 %v2121_v19  ;;  %v2053_v20 = vld [vmem:[#allocation3] sm:$0xff]  ;;  %v2054_v62 = vld [vmem:[#allocation3 + $0x8] sm:$0xff]  ;;  %v2079_v2 = vld [vmem:[#allocation3 + $0xd0] sm:$0xff]  ;;  %s2794_s2 = scalar_lea.vmem %s2295_s22, 128  ;;  %p2799_p13 = scmp.lt.s32.totalorder %s2295_s22, %s2295_s22 }
 0x4cc   :  { %2424 = vmatprep.subr.bf16.mxu0 %v2077_v55  ;;  %v2069_v57 = vld [vmem:[#allocation3 + $0x80] sm:$0xff]  ;;  %2403 = vmatpush3.bf16.msra.mxu1 %v2053_v20  ;;  %v2070_v63 = vld [vmem:[#allocation3 + $0x88] sm:$0xff]  ;;  %v2055_v3 = vld [vmem:[#allocation3 + $0x10] sm:$0xff]  ;;  %p2795_p12 = scmp.ne.s32.totalorder %s2295_s22, %s2794_s2  ;;  %p2800_p0 = scmp.lt.s32.totalorder %s2794_s2, %s2794_s2 }
 0x4cd   :  { %2425 = vmatpush3.bf16.msra.mxu0 %v2069_v57  ;;  %2404 = vmatprep.subr.bf16.mxu1 %v2062_v58  ;;  %v2071_v5 = vld [vmem:[#allocation3 + $0x90] sm:$0xff]  ;;  %v2064_v6 = vld [vmem:[#allocation3 + $0x58] sm:$0xff]  ;;  %v2065_v10 = vld [vmem:[#allocation3 + $0x60] sm:$0xff] }
 0x4ce   :  { %2426 = vmatprep.subr.bf16.mxu0 %v2078_v59  ;;  %v2080_v7 = vld [vmem:[#allocation3 + $0xd8] sm:$0xff]  ;;  %v2081_v12 = vld [vmem:[#allocation3 + $0xe0] sm:$0xff]  ;;  %v2066_v15 = vld [vmem:[#allocation3 + $0x68] sm:$0xff]  ;;  %p2801_p1 = por %p2800_p0, %p2799_p13 }
 0x4cf   :  { %v2056_v8 = vld [vmem:[#allocation3 + $0x18] sm:$0xff]  ;;  %v2057_v52 = vld [vmem:[#allocation3 + $0x20] sm:$0xff]  ;;  %v2082_v17 = vld [vmem:[#allocation3 + $0xe8] sm:$0xff] }
 0x4d0   :  { %2405 = vmatpush3.bf16.msra.mxu1 %v2054_v62  ;;  %v2072_v51 = vld [vmem:[#allocation3 + $0x98] sm:$0xff]  ;;  %v2073_v13 = vld [vmem:[#allocation3 + $0xa0] sm:$0xff]  ;;  %v2058_v18 = vld [vmem:[#allocation3 + $0x28] sm:$0xff]  ;;  %v2122_v62 = vpack.c.bf16 %v3212_v50, %v3212_v50  ;;  %p2802_p2 = pnand %p2801_p1, %p2795_p12 }
 0x4d1   :  { %2427 = vmatpush3.bf16.msra.mxu0 %v2070_v63  ;;  %2406 = vmatprep.subr.bf16.mxu1 %v2063_v53  ;;  %v2074_v30 = vld [vmem:[#allocation3 + $0xa8] sm:$0xff]  ;;  %v2067_v11 = vld [vmem:[#allocation3 + $0x70] sm:$0xff]  ;;  %v2068_v9 = vld [vmem:[#allocation3 + $0x78] sm:$0xff]  ;;  %v2124_v63 = vpack.c.bf16 %v3216_v31, %v3216_v31 }
 0x4d2   :  { %2428 = vmatprep.subr.bf16.mxu0 %v2079_v2  ;;  %v2083_v34 = vld [vmem:[#allocation3 + $0xf0] sm:$0xff]  ;;  %v2084_v25 = vld [vmem:[#allocation3 + $0xf8] sm:$0xff]  ;;  %v2093_v39 = vld [vmem:[#allocation3 + $0x140] sm:$0xff] }
 0x4d3   :  { %v2059_v14 = vld [vmem:[#allocation3 + $0x30] sm:$0xff]  ;;  %v2060_v35 = vld [vmem:[#allocation3 + $0x38] sm:$0xff]  ;;  %v2109_v29 = vld [vmem:[#allocation3 + $0x1c0] sm:$0xff] }
 0x4d4   :  { %2407 = vmatpush3.bf16.msra.mxu1 %v2055_v3  ;;  %v2075_v24 = vld [vmem:[#allocation3 + $0xb0] sm:$0xff]  ;;  %v2076_v33 = vld [vmem:[#allocation3 + $0xb8] sm:$0xff]  ;;  %v2085_v36 = vld [vmem:[#allocation3 + $0x100] sm:$0xff] }
 0x4d5   :  { %2429 = vmatpush3.bf16.msra.mxu0 %v2071_v5  ;;  %2408 = vmatprep.subr.bf16.mxu1 %v2064_v6  ;;  %v2101_v41 = vld [vmem:[#allocation3 + $0x180] sm:$0xff]  ;;  %v2094_v4 = vld [vmem:[#allocation3 + $0x148] sm:$0xff]  ;;  %v2095_v22 = vld [vmem:[#allocation3 + $0x150] sm:$0xff] }
 0x4d6   :  { %2430 = vmatprep.subr.bf16.mxu0 %v2080_v7  ;;  %v2110_v43 = vld [vmem:[#allocation3 + $0x1c8] sm:$0xff]  ;;  %v2111_v44 = vld [vmem:[#allocation3 + $0x1d0] sm:$0xff]  ;;  %v2096_v47 = vld [vmem:[#allocation3 + $0x158] sm:$0xff] }
 0x4d7   :  { %v2086_v16 = vld [vmem:[#allocation3 + $0x108] sm:$0xff]  ;;  %v2087_v45 = vld [vmem:[#allocation3 + $0x110] sm:$0xff]  ;;  %v2112_v48 = vld [vmem:[#allocation3 + $0x1d8] sm:$0xff] }
 0x4d8   :  { %2409 = vmatpush3.bf16.msra.mxu1 %v2056_v8  ;;  %v2102_v42 = vld [vmem:[#allocation3 + $0x188] sm:$0xff]  ;;  %v2103_v46 = vld [vmem:[#allocation3 + $0x190] sm:$0xff]  ;;  %v2088_v54 = vld [vmem:[#allocation3 + $0x118] sm:$0xff] }
 0x4d9   :  { %2431 = vmatpush3.bf16.msra.mxu0 %v2072_v51  ;;  %2410 = vmatprep.subr.bf16.mxu1 %v2065_v10  ;;  %v2104_v56 = vld [vmem:[#allocation3 + $0x198] sm:$0xff]  ;;  %v2097_v60 = vld [vmem:[#allocation3 + $0x160] sm:$0xff]  ;;  %v2098_v1 = vld [vmem:[#allocation3 + $0x168] sm:$0xff] }
 0x4da   :  { %2432 = vmatprep.subr.bf16.mxu0 %v2081_v12  ;;  %v2113_v61 = vld [vmem:[#allocation3 + $0x1e0] sm:$0xff]  ;;  %v2114_v21 = vld [vmem:[#allocation3 + $0x1e8] sm:$0xff]  ;;  %v2099_v27 = vld [vmem:[#allocation3 + $0x170] sm:$0xff] }
 0x4db   :  { %v2089_v49 = vld [vmem:[#allocation3 + $0x120] sm:$0xff]  ;;  %v2090_v23 = vld [vmem:[#allocation3 + $0x128] sm:$0xff]  ;;  %v2115_v19 = vld [vmem:[#allocation3 + $0x1f0] sm:$0xff] }
 0x4dc   :  { %2411 = vmatpush3.bf16.msra.mxu1 %v2057_v52  ;;  %v2105_v0 = vld [vmem:[#allocation3 + $0x1a0] sm:$0xff]  ;;  %v2106_v37 = vld [vmem:[#allocation3 + $0x1a8] sm:$0xff]  ;;  %v2091_v28 = vld [vmem:[#allocation3 + $0x130] sm:$0xff] }
 0x4dd   :  { %2433 = vmatpush3.bf16.msra.mxu0 %v2073_v13  ;;  %2412 = vmatprep.subr.bf16.mxu1 %v2066_v15  ;;  %v2107_v55 = vld [vmem:[#allocation3 + $0x1b0] sm:$0xff]  ;;  %v2100_v20 = vld [vmem:[#allocation3 + $0x178] sm:$0xff]  ;;  %v2117_v3 = vld [vmem:[#allocation11 + $0x41] ss:$0 sm:$0xff] }
 0x4de   :  { %2434 = vmatprep.subr.bf16.mxu0 %v2082_v17  ;;  %v2116_v57 = vld [vmem:[#allocation3 + $0x1f8] sm:$0xff] }
 0x4df   :  { %v2092_v58 = vld [vmem:[#allocation3 + $0x138] sm:$0xff] }
 0x4e0   :  { %2413 = vmatpush3.bf16.msra.mxu1 %v2058_v18  ;;  %v2108_v59 = vld [vmem:[#allocation3 + $0x1b8] sm:$0xff] }
 0x4e1   :  { %2435 = vmatpush3.bf16.msra.mxu0 %v2074_v30  ;;  %2414 = vmatprep.subr.bf16.mxu1 %v2067_v11 }
 0x4e2   :  { %2436 = vmatprep.subr.bf16.mxu0 %v2083_v34 }
 0x4e4   :  { %2415 = vmatpush3.bf16.msra.mxu1 %v2059_v14 }
 0x4e5   :  { %2437 = vmatpush3.bf16.msra.mxu0 %v2075_v24  ;;  %2416 = vmatprep.subr.bf16.mxu1 %v2068_v9 }
 0x4e6   :  { %2438 = vmatprep.subr.bf16.mxu0 %v2084_v25 }
 0x4e8   :  { %2417 = vmatpush3.bf16.msra.mxu1 %v2060_v35 }
 0x4e9   :  { %2439 = vmatpush3.bf16.msra.mxu0 %v2076_v33  ;;  %2446 = vmatprep.subr.bf16.mxu1 %v2093_v39 }
 0x4ea   :  { %2468 = vmatprep.subr.bf16.mxu0 %v2109_v29 }
 0x4eb   :  { %2159 = vmatmul.mubr.bf16.vlgmr.msra.gmra.mrb[12].mxu1 %v2118_v32 }
 0x4ec   :  { %2199 = vmatmul.mubr.bf16.vlgmr.msra.gmra.mrb[16].mxu0 %v2120_v40  ;;  %2447 = vmatpush3.bf16.msra.mxu1 %v2085_v36 }
 0x4ed   :  { %2469 = vmatpush3.bf16.msra.mxu0 %v2101_v41  ;;  %2448 = vmatprep.subr.bf16.mxu1 %v2094_v4 }
 0x4ee   :  { %2470 = vmatprep.subr.bf16.mxu0 %v2110_v43  ;;  %2238 = vmatprep.mubr.bf16.mxu1 %v2123_v38 }
 0x4ef   :  { %2278 = vmatprep.mubr.bf16.mxu0 %v2125_v26 }
 0x4f0   :  { %2449 = vmatpush3.bf16.msra.mxu1 %v2086_v16 }
 0x4f1   :  { %2471 = vmatpush3.bf16.msra.mxu0 %v2102_v42  ;;  %2450 = vmatprep.subr.bf16.mxu1 %v2095_v22 }
 0x4f2   :  { %2472 = vmatprep.subr.bf16.mxu0 %v2111_v44 }
 0x4f4   :  { %2451 = vmatpush3.bf16.msra.mxu1 %v2087_v45 }
 0x4f5   :  { %2473 = vmatpush3.bf16.msra.mxu0 %v2103_v46  ;;  %2452 = vmatprep.subr.bf16.mxu1 %v2096_v47 }
 0x4f6   :  { %2474 = vmatprep.subr.bf16.mxu0 %v2112_v48 }
 0x4f8   :  { %2453 = vmatpush3.bf16.msra.mxu1 %v2088_v54 }
 0x4f9   :  { %2475 = vmatpush3.bf16.msra.mxu0 %v2104_v56  ;;  %2454 = vmatprep.subr.bf16.mxu1 %v2097_v60 }
 0x4fa   :  { %2476 = vmatprep.subr.bf16.mxu0 %v2113_v61 }
 0x4fc   :  { %2455 = vmatpush3.bf16.msra.mxu1 %v2089_v49 }
 0x4fd   :  { %2477 = vmatpush3.bf16.msra.mxu0 %v2105_v0  ;;  %2456 = vmatprep.subr.bf16.mxu1 %v2098_v1 }
 0x4fe   :  { %2478 = vmatprep.subr.bf16.mxu0 %v2114_v21 }
 0x500   :  { %2457 = vmatpush3.bf16.msra.mxu1 %v2090_v23 }
 0x501   :  { %2479 = vmatpush3.bf16.msra.mxu0 %v2106_v37  ;;  %2458 = vmatprep.subr.bf16.mxu1 %v2099_v27 }
 0x502   :  { %2480 = vmatprep.subr.bf16.mxu0 %v2115_v19 }
 0x504   :  { %2459 = vmatpush3.bf16.msra.mxu1 %v2091_v28 }
 0x505   :  { %2481 = vmatpush3.bf16.msra.mxu0 %v2107_v55  ;;  %2460 = vmatprep.subr.bf16.mxu1 %v2100_v20 }
 0x506   :  { %2482 = vmatprep.subr.bf16.mxu0 %v2116_v57 }
 0x508   :  { %2461 = vmatpush3.bf16.msra.mxu1 %v2092_v58 }
 0x509   :  { %2483 = vmatpush3.bf16.msra.mxu0 %v2108_v59 }
 0x50b   :  { %2239 = vmatmul.mubr.bf16.vlgmr.msra.gmra.mrb[16].mxu1 %v2122_v62 }
 0x50c   :  { %2279 = vmatmul.mubr.bf16.vlgmr.msra.gmra.mrb[20].mxu0 %v2124_v63 }
 0x5be   :  { %v2418_v53 = vpop.f32.mrb[12].mxu1 }
 0x5bf   :  { %v2440_v2 = vpop.f32.mrb[16].mxu0  ;;  %v2419_v5 = vpop.f32.mrb[13].mxu1 }
 0x5c0   :  { %v2441_v6 = vpop.f32.mrb[17].mxu0  ;;  %v2420_v7 = vadd.f32 %v2419_v5, %v2418_v53  ;;  %v2421_v51 = vpop.f32.mrb[14].mxu1 }
 0x5c1   :  { %v2442_v8 = vadd.f32 %v2441_v6, %v2440_v2  ;;  %v2443_v10 = vpop.f32.mrb[18].mxu0  ;;  %v2422_v12 = vpop.f32.mrb[15].mxu1 }
 0x5c2   :  { %v2444_v52 = vpop.f32.mrb[19].mxu0  ;;  %v2161_v13 = vadd.f32 %v2420_v7, %v2117_v3 }
 0x5c4   :  { %v2201_v50 = vadd.f32 %v2442_v8, %v2161_v13 }
 0x5de   :  { %v2462_v15 = vpop.f32.mrb[16].mxu1 }
 0x5df   :  { %v2484_v17 = vpop.f32.mrb[20].mxu0  ;;  %v2463_v31 = vpop.f32.mrb[17].mxu1 }
 0x5e0   :  { %v2485_v18 = vpop.f32.mrb[21].mxu0  ;;  %v2464_v30 = vadd.f32 %v2463_v31, %v2462_v15  ;;  %v2465_v34 = vpop.f32.mrb[18].mxu1 }
 0x5e1   :  { %v2486_v11 = vadd.f32 %v2485_v18, %v2484_v17  ;;  %v2487_v14 = vpop.f32.mrb[22].mxu0  ;;  %v2466_v24 = vpop.f32.mrb[19].mxu1 }
 0x5e2   :  { %v2488_v9 = vpop.f32.mrb[23].mxu0  ;;  %v2241_v25 = vadd.f32 %v2464_v30, %v2201_v50 }
 0x5e4   :  { %v2281_v35 = vadd.f32 %v2486_v11, %v2241_v25 }
 0x5e6   :  { %2682 = vtanh.f32 %v2281_v35 }
 0x5f0   :  { %v2683_v33 = vpop.eup %2682 }
 0x5f1   :  { %2287 = vst [vmem:[#allocation13] sm:$0xff] %v2683_v33 }
 0x5f2   :  { %2805 = shalt.err (!%p2802_p2)
}
 0x5f3   :  { %s2806_s24 = scalar_lea.hbm %s3250_s6, 128 }
 0x5f4   :  { %p2807_p3 = scmp.ne.s32.totalorder %s3250_s6, %s2806_s24  ;;  %p2810_p4 = scmp.lt.u32.totalorder %s2806_s24, %s3250_s6 }
 0x5f6   :  { %p2812_p5 = pnand %p2810_p4, %p2807_p3 }
 0x5f8   :  { %2815 = shalt.err (!%p2812_p5)
}
 0x5f9   :  { %2297 = dma.vmem_to_hbm [thread:$0]  %s2295_s22, 128, %s3250_s6, [#allocation7]  }
 0x5fa   :  { %2826 = dma.done.wait [#allocation7], 128  }
 0x5fb   :  { %2827 = vsyncadd [#allocation7], 4294967168 }
 0x5fc   :  { %2301 = vsyncpa [#allocation6], 1 }
 0x5fd   :  { %2302 = vsyncpa [#allocation9], 1 }
 0x5fe   :  { %2303 = vsyncpa [#allocation12], 1 }
 0x5ff   :  { %2304 = vsyncpa [#allocation7], 1 }
 0x600   :  { %2305 = vsyncmov [#allocation4] }
 0x603   :  { %s2306_s30 = vpop.sfrf %2305 }
 0x604   :  { %p2400_p6 = scmp.ne.s32.totalorder %s2306_s30, 0 }
 0x606   :  { %2310 = shalt.err (%p2400_p6)  }
 0x607   :  { %2312 = vsyncmov [#allocation4 + $0x1] }
 0x60a   :  { %s2313_s9 = vpop.sfrf %2312 }
 0x60b   :  { %p2401_p7 = scmp.ne.s32.totalorder %s2313_s9, 0 }
 0x60d   :  { %2317 = shalt.err (%p2401_p7)  }

</bundles_post_ra>
